<compile_context>
chip_gen: v5e
topology: v5e:2x2
jax: 0.10.0
libtpu: 0.0.40
codegen_flags: <defaults>
</compile_context>

<pallas_src>
import jax
import jax.numpy as jnp
from jax import lax
from jax.experimental import pallas as pl
from jax.experimental.pallas import tpu as pltpu

HIDDEN = 100
INPUT_SIZE = 1
OUTPUT_SIZE = 1
HP = 128   # padded hidden size (lane aligned)
OP = 128   # padded output size (lane aligned)

# Per-gate activation affine: sigmoid(z) = 0.5*tanh(0.5*z) + 0.5 for i/f/o, tanh(z) for g.
# The 0.5 pre-scale is folded into the packed weights; these are the post-tanh constants.
_GATE_SCALE = (0.5, 0.5, 1.0, 0.5)   # also the pre-scale folded into W_ih / W_hh / bias
_GATE_BIAS = (0.5, 0.5, 0.0, 0.5)


def _lstm_kernel(x_ref, wih_ref, whh_ref, b_ref, wout_ref, bout_ref,
                 h0_ref, c0_ref, a_ref, abias_ref, out_ref, xproj_sc):
    T = x_ref.shape[0]

    # Hoisted, pre-scaled input projection: pure VPU outer product (INPUT_SIZE == 1).
    xproj_sc[...] = x_ref[...] * wih_ref[...] + b_ref[...]          # (T, 4*HP)

    # Hoist loop-invariant activation constants into vregs (JAX does not CSE broadcasts).
    act_a = a_ref[...]          # (1, 4*HP)
    act_b = abias_ref[...]      # (1, 4*HP)

    def step(t, carry):
        h, c = carry
        # Only the dependent recurrent matmul remains on the per-step critical path.
        # TODO(synk): on v5e/v6e/v7x, holding w_hh resident in MXU staging registers via
        # pltpu.matmul_push_rhs / matmul_acc_lhs / matmul_pop (MRB accumulation of xproj
        # on v7x) would avoid re-pushing the (HP, 4*HP) weight every step; kept on jnp.dot
        # for portability/robustness.
        z = xproj_sc[pl.ds(t, 1), :] + jnp.dot(h, whh_ref[...],
                                               preferred_element_type=jnp.float32)
        act = act_a * jnp.tanh(z) + act_b                           # one fused EUP pass
        i = act[:, 0 * HP:1 * HP]
        f = act[:, 1 * HP:2 * HP]
        g = act[:, 2 * HP:3 * HP]
        o = act[:, 3 * HP:4 * HP]
        c_new = f * c + i * g
        h_new = o * jnp.tanh(c_new)
        return (h_new, c_new)

    # State stays in vregs across the loop; capped unroll keeps code size bounded for big T.
    h_final, _ = lax.fori_loop(0, T, step, (h0_ref[...], c0_ref[...]),
                               unroll=min(T, 8))

    # predictions[-1] = Linear(lstm_out[-1]) = Linear(h_T)
    out_ref[...] = (jnp.dot(h_final, wout_ref[...],
                            preferred_element_type=jnp.float32)
                    + bout_ref[...])


def _gate_scale_vec():
    return jnp.repeat(jnp.array(_GATE_SCALE, jnp.float32), HP).reshape(1, 4 * HP)


def _gate_bias_vec():
    return jnp.repeat(jnp.array(_GATE_BIAS, jnp.float32), HP).reshape(1, 4 * HP)


def _pack_gate_matrix(w, in_dim, in_pad):
    # w: (4*HIDDEN, in_dim), PyTorch gate order [i, f, g, o] stacked along dim 0.
    # Returns the transposed, hidden-padded, gate-prescaled matrix of shape (in_pad, 4*HP).
    scale = jnp.array(_GATE_SCALE, jnp.float32)[:, None, None]
    w4 = w.reshape(4, HIDDEN, in_dim).astype(jnp.float32) * scale
    w4 = jnp.pad(w4, ((0, 0), (0, HP - HIDDEN), (0, in_pad - in_dim)))
    return jnp.transpose(w4, (2, 0, 1)).reshape(in_pad, 4 * HP)


def lstm_forward_pallas(input_seq, params):
    w_ih, w_hh, b_ih, b_hh, w_lin, b_lin = params
    T = input_seq.shape[0]

    # Glue: pack / pad parameters into lane-aligned, gate-prescaled layouts.
    x = input_seq[:, None].astype(jnp.float32)                           # (T, 1)
    wih_row = _pack_gate_matrix(w_ih, INPUT_SIZE, 1)                     # (1, 4*HP)
    whh_t = _pack_gate_matrix(w_hh, HIDDEN, HP)                          # (HP, 4*HP)
    scale = jnp.array(_GATE_SCALE, jnp.float32)[:, None]
    b = jnp.pad((b_ih + b_hh).reshape(4, HIDDEN) * scale,
                ((0, 0), (0, HP - HIDDEN))).reshape(1, 4 * HP)           # (1, 4*HP)
    wout_t = jnp.pad(w_lin.T, ((0, HP - HIDDEN), (0, OP - OUTPUT_SIZE))) # (HP, OP)
    bout = jnp.pad(b_lin[None, :], ((0, 0), (0, OP - OUTPUT_SIZE)))      # (1, OP)
    h0 = jnp.pad(jnp.ones((1, HIDDEN), jnp.float32), ((0, 0), (0, HP - HIDDEN)))
    c0 = jnp.pad(jnp.ones((1, HIDDEN), jnp.float32), ((0, 0), (0, HP - HIDDEN)))
    act_a = _gate_scale_vec()                                            # (1, 4*HP)
    act_b = _gate_bias_vec()                                             # (1, 4*HP)

    vmem = pl.BlockSpec(memory_space=pltpu.MemorySpace.VMEM)
    out = pl.pallas_call(
        _lstm_kernel,
        out_shape=jax.ShapeDtypeStruct((1, OP), jnp.float32),
        in_specs=[vmem] * 10,
        out_specs=vmem,
        scratch_shapes=[pltpu.VMEM((T, 4 * HP), jnp.float32)],  # hoisted x projection
    )(x, wih_row, whh_t, b, wout_t, bout, h0, c0, act_a, act_b)

    return out[0, :OUTPUT_SIZE]   # shape (output_size,) == predictions[-1]


def lstm_forward_ref(input_seq, params):
    # Pure-JAX reference mirroring PyTorch nn.LSTM + nn.Linear semantics.
    w_ih, w_hh, b_ih, b_hh, w_lin, b_lin = params
    h = jnp.ones((1, HIDDEN), jnp.float32)
    c = jnp.ones((1, HIDDEN), jnp.float32)

    def step(carry, x_t):
        h, c = carry
        gates = x_t[None, :] @ w_ih.T + h @ w_hh.T + b_ih + b_hh
        i, f, g, o = jnp.split(gates, 4, axis=-1)
        i, f, o = jax.nn.sigmoid(i), jax.nn.sigmoid(f), jax.nn.sigmoid(o)
        g = jnp.tanh(g)
        c = f * c + i * g
        h = o * jnp.tanh(c)
        return (h, c), h

    (_, _), hs = lax.scan(step, (h, c), input_seq[:, None].astype(jnp.float32))
    preds = hs[:, 0, :] @ w_lin.T + b_lin
    return preds[-1]


def init_params(key):
    # PyTorch default init: U(-1/sqrt(hidden), 1/sqrt(hidden)) for all LSTM / Linear params.
    k = 1.0 / jnp.sqrt(jnp.float32(HIDDEN))
    ks = jax.random.split(key, 6)
    w_ih = jax.random.uniform(ks[0], (4 * HIDDEN, INPUT_SIZE), jnp.float32, -k, k)
    w_hh = jax.random.uniform(ks[1], (4 * HIDDEN, HIDDEN), jnp.float32, -k, k)
    b_ih = jax.random.uniform(ks[2], (4 * HIDDEN,), jnp.float32, -k, k)
    b_hh = jax.random.uniform(ks[3], (4 * HIDDEN,), jnp.float32, -k, k)
    w_lin = jax.random.uniform(ks[4], (OUTPUT_SIZE, HIDDEN), jnp.float32, -k, k)
    b_lin = jax.random.uniform(ks[5], (OUTPUT_SIZE,), jnp.float32, -k, k)
    return w_ih, w_hh, b_ih, b_hh, w_lin, b_lin


if __name__ == "__main__":
    key = jax.random.PRNGKey(0)
    pkey, xkey = jax.random.split(key)
    params = init_params(pkey)

    T = 8
    input_seq = jax.random.normal(xkey, (T,), jnp.float32)

    out = jax.block_until_ready(lstm_forward_pallas(input_seq, params))
    ref = jax.block_until_ready(lstm_forward_ref(input_seq, params))

    assert out.shape == (OUTPUT_SIZE,), out.shape
    assert jnp.allclose(out, ref, atol=1e-4, rtol=1e-4), (out, ref)
    print("KERNEL_OK")
</pallas_src>

<mosaic_0001>
module attributes {stable_mosaic.version = 11 : i64} {
  func.func @_lstm_kernel(%arg0: memref<8x1xf32, #tpu.memory_space<vmem>>, %arg1: memref<1x512xf32, #tpu.memory_space<vmem>>, %arg2: memref<128x512xf32, #tpu.memory_space<vmem>>, %arg3: memref<1x512xf32, #tpu.memory_space<vmem>>, %arg4: memref<128x128xf32, #tpu.memory_space<vmem>>, %arg5: memref<1x128xf32, #tpu.memory_space<vmem>>, %arg6: memref<1x128xf32, #tpu.memory_space<vmem>>, %arg7: memref<1x128xf32, #tpu.memory_space<vmem>>, %arg8: memref<1x512xf32, #tpu.memory_space<vmem>>, %arg9: memref<1x512xf32, #tpu.memory_space<vmem>>, %arg10: memref<1x128xf32, #tpu.memory_space<vmem>>, %arg11: memref<8x512xf32, #tpu.memory_space<vmem>>) attributes {dimension_semantics = [], scalar_prefetch = 0 : i64, scratch_operands = 1 : i64, tpu.core_type = #tpu.core_type<tc>} {
    %c0 = arith.constant 0 : index
    %c0_0 = arith.constant 0 : index
    %0 = vector.load %arg0[%c0, %c0_0] : memref<8x1xf32, #tpu.memory_space<vmem>>, vector<8x1xf32>
    %c0_1 = arith.constant 0 : index
    %c0_2 = arith.constant 0 : index
    %1 = vector.load %arg1[%c0_1, %c0_2] : memref<1x512xf32, #tpu.memory_space<vmem>>, vector<1x512xf32>
    %2 = vector.broadcast %0 : vector<8x1xf32> to vector<8x512xf32>
    %3 = vector.broadcast %1 : vector<1x512xf32> to vector<8x512xf32>
    %4 = arith.mulf %2, %3 : vector<8x512xf32>
    %c0_3 = arith.constant 0 : index
    %c0_4 = arith.constant 0 : index
    %5 = vector.load %arg3[%c0_3, %c0_4] : memref<1x512xf32, #tpu.memory_space<vmem>>, vector<1x512xf32>
    %6 = vector.broadcast %5 : vector<1x512xf32> to vector<8x512xf32>
    %7 = arith.addf %4, %6 : vector<8x512xf32>
    %c0_5 = arith.constant 0 : index
    %c0_6 = arith.constant 0 : index
    %8 = vector.load %arg11[%c0_5, %c0_6] : memref<8x512xf32, #tpu.memory_space<vmem>>, vector<8x512xf32>
    tpu.vector_store %arg11[%c0_5, %c0_6], %7 {strides = array<i32>} : memref<8x512xf32, #tpu.memory_space<vmem>>, vector<8x512xf32>,
    %c0_7 = arith.constant 0 : index
    %c0_8 = arith.constant 0 : index
    %9 = vector.load %arg8[%c0_7, %c0_8] : memref<1x512xf32, #tpu.memory_space<vmem>>, vector<1x512xf32>
    %c0_9 = arith.constant 0 : index
    %c0_10 = arith.constant 0 : index
    %10 = vector.load %arg9[%c0_9, %c0_10] : memref<1x512xf32, #tpu.memory_space<vmem>>, vector<1x512xf32>
    %c0_11 = arith.constant 0 : index
    %c0_12 = arith.constant 0 : index
    %11 = vector.load %arg6[%c0_11, %c0_12] : memref<1x128xf32, #tpu.memory_space<vmem>>, vector<1x128xf32>
    %c0_13 = arith.constant 0 : index
    %c0_14 = arith.constant 0 : index
    %12 = vector.load %arg7[%c0_13, %c0_14] : memref<1x128xf32, #tpu.memory_space<vmem>>, vector<1x128xf32>
    %c0_i32 = arith.constant 0 : i32
    %13 = arith.index_cast %c0_i32 : i32 to index
    %c0_15 = arith.constant 0 : index
    %14 = vector.load %arg11[%13, %c0_15] : memref<8x512xf32, #tpu.memory_space<vmem>>, vector<1x512xf32>
    %c0_16 = arith.constant 0 : index
    %c0_17 = arith.constant 0 : index
    %15 = vector.load %arg2[%c0_16, %c0_17] : memref<128x512xf32, #tpu.memory_space<vmem>>, vector<128x512xf32>
    %cst = arith.constant dense<0.000000e+00> : vector<1x512xf32>
    %16 = tpu.matmul %11, %15, %cst {dimension_numbers = #tpu.dot_dimension_numbers<[1], [0], [0], [1], [0, 0, 1, 1], [], []>} : vector<1x128xf32>, vector<128x512xf32>, vector<1x512xf32> -> vector<1x512xf32>
    %17 = arith.addf %14, %16 : vector<1x512xf32>
    %18 = math.tanh %17 : vector<1x512xf32>
    %19 = arith.mulf %9, %18 : vector<1x512xf32>
    %20 = arith.addf %19, %10 : vector<1x512xf32>
    %21 = vector.extract_strided_slice %20 {offsets = [0, 0], sizes = [1, 128], strides = [1, 1]} : vector<1x512xf32> to vector<1x128xf32>
    %22 = vector.extract_strided_slice %20 {offsets = [0, 128], sizes = [1, 128], strides = [1, 1]} : vector<1x512xf32> to vector<1x128xf32>
    %23 = vector.extract_strided_slice %20 {offsets = [0, 256], sizes = [1, 128], strides = [1, 1]} : vector<1x512xf32> to vector<1x128xf32>
    %24 = vector.extract_strided_slice %20 {offsets = [0, 384], sizes = [1, 128], strides = [1, 1]} : vector<1x512xf32> to vector<1x128xf32>
    %25 = arith.mulf %22, %12 : vector<1x128xf32>
    %26 = arith.mulf %21, %23 : vector<1x128xf32>
    %27 = arith.addf %25, %26 : vector<1x128xf32>
    %28 = math.tanh %27 : vector<1x128xf32>
    %29 = arith.mulf %24, %28 : vector<1x128xf32>
    %c1_i32 = arith.constant 1 : i32
    %30 = arith.index_cast %c1_i32 : i32 to index
    %c0_18 = arith.constant 0 : index
    %31 = vector.load %arg11[%30, %c0_18] : memref<8x512xf32, #tpu.memory_space<vmem>>, vector<1x512xf32>
    %c0_19 = arith.constant 0 : index
    %c0_20 = arith.constant 0 : index
    %32 = vector.load %arg2[%c0_19, %c0_20] : memref<128x512xf32, #tpu.memory_space<vmem>>, vector<128x512xf32>
    %cst_21 = arith.constant dense<0.000000e+00> : vector<1x512xf32>
    %33 = tpu.matmul %29, %32, %cst_21 {dimension_numbers = #tpu.dot_dimension_numbers<[1], [0], [0], [1], [0, 0, 1, 1], [], []>} : vector<1x128xf32>, vector<128x512xf32>, vector<1x512xf32> -> vector<1x512xf32>
    %34 = arith.addf %31, %33 : vector<1x512xf32>
    %35 = math.tanh %34 : vector<1x512xf32>
    %36 = arith.mulf %9, %35 : vector<1x512xf32>
    %37 = arith.addf %36, %10 : vector<1x512xf32>
    %38 = vector.extract_strided_slice %37 {offsets = [0, 0], sizes = [1, 128], strides = [1, 1]} : vector<1x512xf32> to vector<1x128xf32>
    %39 = vector.extract_strided_slice %37 {offsets = [0, 128], sizes = [1, 128], strides = [1, 1]} : vector<1x512xf32> to vector<1x128xf32>
    %40 = vector.extract_strided_slice %37 {offsets = [0, 256], sizes = [1, 128], strides = [1, 1]} : vector<1x512xf32> to vector<1x128xf32>
    %41 = vector.extract_strided_slice %37 {offsets = [0, 384], sizes = [1, 128], strides = [1, 1]} : vector<1x512xf32> to vector<1x128xf32>
    %42 = arith.mulf %39, %27 : vector<1x128xf32>
    %43 = arith.mulf %38, %40 : vector<1x128xf32>
    %44 = arith.addf %42, %43 : vector<1x128xf32>
    %45 = math.tanh %44 : vector<1x128xf32>
    %46 = arith.mulf %41, %45 : vector<1x128xf32>
    %c2_i32 = arith.constant 2 : i32
    %47 = arith.index_cast %c2_i32 : i32 to index
    %c0_22 = arith.constant 0 : index
    %48 = vector.load %arg11[%47, %c0_22] : memref<8x512xf32, #tpu.memory_space<vmem>>, vector<1x512xf32>
    %c0_23 = arith.constant 0 : index
    %c0_24 = arith.constant 0 : index
    %49 = vector.load %arg2[%c0_23, %c0_24] : memref<128x512xf32, #tpu.memory_space<vmem>>, vector<128x512xf32>
    %cst_25 = arith.constant dense<0.000000e+00> : vector<1x512xf32>
    %50 = tpu.matmul %46, %49, %cst_25 {dimension_numbers = #tpu.dot_dimension_numbers<[1], [0], [0], [1], [0, 0, 1, 1], [], []>} : vector<1x128xf32>, vector<128x512xf32>, vector<1x512xf32> -> vector<1x512xf32>
    %51 = arith.addf %48, %50 : vector<1x512xf32>
    %52 = math.tanh %51 : vector<1x512xf32>
    %53 = arith.mulf %9, %52 : vector<1x512xf32>
    %54 = arith.addf %53, %10 : vector<1x512xf32>
    %55 = vector.extract_strided_slice %54 {offsets = [0, 0], sizes = [1, 128], strides = [1, 1]} : vector<1x512xf32> to vector<1x128xf32>
    %56 = vector.extract_strided_slice %54 {offsets = [0, 128], sizes = [1, 128], strides = [1, 1]} : vector<1x512xf32> to vector<1x128xf32>
    %57 = vector.extract_strided_slice %54 {offsets = [0, 256], sizes = [1, 128], strides = [1, 1]} : vector<1x512xf32> to vector<1x128xf32>
    %58 = vector.extract_strided_slice %54 {offsets = [0, 384], sizes = [1, 128], strides = [1, 1]} : vector<1x512xf32> to vector<1x128xf32>
    %59 = arith.mulf %56, %44 : vector<1x128xf32>
    %60 = arith.mulf %55, %57 : vector<1x128xf32>
    %61 = arith.addf %59, %60 : vector<1x128xf32>
    %62 = math.tanh %61 : vector<1x128xf32>
    %63 = arith.mulf %58, %62 : vector<1x128xf32>
    %c3_i32 = arith.constant 3 : i32
    %64 = arith.index_cast %c3_i32 : i32 to index
    %c0_26 = arith.constant 0 : index
    %65 = vector.load %arg11[%64, %c0_26] : memref<8x512xf32, #tpu.memory_space<vmem>>, vector<1x512xf32>
    %c0_27 = arith.constant 0 : index
    %c0_28 = arith.constant 0 : index
    %66 = vector.load %arg2[%c0_27, %c0_28] : memref<128x512xf32, #tpu.memory_space<vmem>>, vector<128x512xf32>
    %cst_29 = arith.constant dense<0.000000e+00> : vector<1x512xf32>
    %67 = tpu.matmul %63, %66, %cst_29 {dimension_numbers = #tpu.dot_dimension_numbers<[1], [0], [0], [1], [0, 0, 1, 1], [], []>} : vector<1x128xf32>, vector<128x512xf32>, vector<1x512xf32> -> vector<1x512xf32>
    %68 = arith.addf %65, %67 : vector<1x512xf32>
    %69 = math.tanh %68 : vector<1x512xf32>
    %70 = arith.mulf %9, %69 : vector<1x512xf32>
    %71 = arith.addf %70, %10 : vector<1x512xf32>
    %72 = vector.extract_strided_slice %71 {offsets = [0, 0], sizes = [1, 128], strides = [1, 1]} : vector<1x512xf32> to vector<1x128xf32>
    %73 = vector.extract_strided_slice %71 {offsets = [0, 128], sizes = [1, 128], strides = [1, 1]} : vector<1x512xf32> to vector<1x128xf32>
    %74 = vector.extract_strided_slice %71 {offsets = [0, 256], sizes = [1, 128], strides = [1, 1]} : vector<1x512xf32> to vector<1x128xf32>
    %75 = vector.extract_strided_slice %71 {offsets = [0, 384], sizes = [1, 128], strides = [1, 1]} : vector<1x512xf32> to vector<1x128xf32>
    %76 = arith.mulf %73, %61 : vector<1x128xf32>
    %77 = arith.mulf %72, %74 : vector<1x128xf32>
    %78 = arith.addf %76, %77 : vector<1x128xf32>
    %79 = math.tanh %78 : vector<1x128xf32>
    %80 = arith.mulf %75, %79 : vector<1x128xf32>
    %c4_i32 = arith.constant 4 : i32
    %81 = arith.index_cast %c4_i32 : i32 to index
    %c0_30 = arith.constant 0 : index
    %82 = vector.load %arg11[%81, %c0_30] : memref<8x512xf32, #tpu.memory_space<vmem>>, vector<1x512xf32>
    %c0_31 = arith.constant 0 : index
    %c0_32 = arith.constant 0 : index
    %83 = vector.load %arg2[%c0_31, %c0_32] : memref<128x512xf32, #tpu.memory_space<vmem>>, vector<128x512xf32>
    %cst_33 = arith.constant dense<0.000000e+00> : vector<1x512xf32>
    %84 = tpu.matmul %80, %83, %cst_33 {dimension_numbers = #tpu.dot_dimension_numbers<[1], [0], [0], [1], [0, 0, 1, 1], [], []>} : vector<1x128xf32>, vector<128x512xf32>, vector<1x512xf32> -> vector<1x512xf32>
    %85 = arith.addf %82, %84 : vector<1x512xf32>
    %86 = math.tanh %85 : vector<1x512xf32>
    %87 = arith.mulf %9, %86 : vector<1x512xf32>
    %88 = arith.addf %87, %10 : vector<1x512xf32>
    %89 = vector.extract_strided_slice %88 {offsets = [0, 0], sizes = [1, 128], strides = [1, 1]} : vector<1x512xf32> to vector<1x128xf32>
    %90 = vector.extract_strided_slice %88 {offsets = [0, 128], sizes = [1, 128], strides = [1, 1]} : vector<1x512xf32> to vector<1x128xf32>
    %91 = vector.extract_strided_slice %88 {offsets = [0, 256], sizes = [1, 128], strides = [1, 1]} : vector<1x512xf32> to vector<1x128xf32>
    %92 = vector.extract_strided_slice %88 {offsets = [0, 384], sizes = [1, 128], strides = [1, 1]} : vector<1x512xf32> to vector<1x128xf32>
    %93 = arith.mulf %90, %78 : vector<1x128xf32>
    %94 = arith.mulf %89, %91 : vector<1x128xf32>
    %95 = arith.addf %93, %94 : vector<1x128xf32>
    %96 = math.tanh %95 : vector<1x128xf32>
    %97 = arith.mulf %92, %96 : vector<1x128xf32>
    %c5_i32 = arith.constant 5 : i32
    %98 = arith.index_cast %c5_i32 : i32 to index
    %c0_34 = arith.constant 0 : index
    %99 = vector.load %arg11[%98, %c0_34] : memref<8x512xf32, #tpu.memory_space<vmem>>, vector<1x512xf32>
    %c0_35 = arith.constant 0 : index
    %c0_36 = arith.constant 0 : index
    %100 = vector.load %arg2[%c0_35, %c0_36] : memref<128x512xf32, #tpu.memory_space<vmem>>, vector<128x512xf32>
    %cst_37 = arith.constant dense<0.000000e+00> : vector<1x512xf32>
    %101 = tpu.matmul %97, %100, %cst_37 {dimension_numbers = #tpu.dot_dimension_numbers<[1], [0], [0], [1], [0, 0, 1, 1], [], []>} : vector<1x128xf32>, vector<128x512xf32>, vector<1x512xf32> -> vector<1x512xf32>
    %102 = arith.addf %99, %101 : vector<1x512xf32>
    %103 = math.tanh %102 : vector<1x512xf32>
    %104 = arith.mulf %9, %103 : vector<1x512xf32>
    %105 = arith.addf %104, %10 : vector<1x512xf32>
    %106 = vector.extract_strided_slice %105 {offsets = [0, 0], sizes = [1, 128], strides = [1, 1]} : vector<1x512xf32> to vector<1x128xf32>
    %107 = vector.extract_strided_slice %105 {offsets = [0, 128], sizes = [1, 128], strides = [1, 1]} : vector<1x512xf32> to vector<1x128xf32>
    %108 = vector.extract_strided_slice %105 {offsets = [0, 256], sizes = [1, 128], strides = [1, 1]} : vector<1x512xf32> to vector<1x128xf32>
    %109 = vector.extract_strided_slice %105 {offsets = [0, 384], sizes = [1, 128], strides = [1, 1]} : vector<1x512xf32> to vector<1x128xf32>
    %110 = arith.mulf %107, %95 : vector<1x128xf32>
    %111 = arith.mulf %106, %108 : vector<1x128xf32>
    %112 = arith.addf %110, %111 : vector<1x128xf32>
    %113 = math.tanh %112 : vector<1x128xf32>
    %114 = arith.mulf %109, %113 : vector<1x128xf32>
    %c6_i32 = arith.constant 6 : i32
    %115 = arith.index_cast %c6_i32 : i32 to index
    %c0_38 = arith.constant 0 : index
    %116 = vector.load %arg11[%115, %c0_38] : memref<8x512xf32, #tpu.memory_space<vmem>>, vector<1x512xf32>
    %c0_39 = arith.constant 0 : index
    %c0_40 = arith.constant 0 : index
    %117 = vector.load %arg2[%c0_39, %c0_40] : memref<128x512xf32, #tpu.memory_space<vmem>>, vector<128x512xf32>
    %cst_41 = arith.constant dense<0.000000e+00> : vector<1x512xf32>
    %118 = tpu.matmul %114, %117, %cst_41 {dimension_numbers = #tpu.dot_dimension_numbers<[1], [0], [0], [1], [0, 0, 1, 1], [], []>} : vector<1x128xf32>, vector<128x512xf32>, vector<1x512xf32> -> vector<1x512xf32>
    %119 = arith.addf %116, %118 : vector<1x512xf32>
    %120 = math.tanh %119 : vector<1x512xf32>
    %121 = arith.mulf %9, %120 : vector<1x512xf32>
    %122 = arith.addf %121, %10 : vector<1x512xf32>
    %123 = vector.extract_strided_slice %122 {offsets = [0, 0], sizes = [1, 128], strides = [1, 1]} : vector<1x512xf32> to vector<1x128xf32>
    %124 = vector.extract_strided_slice %122 {offsets = [0, 128], sizes = [1, 128], strides = [1, 1]} : vector<1x512xf32> to vector<1x128xf32>
    %125 = vector.extract_strided_slice %122 {offsets = [0, 256], sizes = [1, 128], strides = [1, 1]} : vector<1x512xf32> to vector<1x128xf32>
    %126 = vector.extract_strided_slice %122 {offsets = [0, 384], sizes = [1, 128], strides = [1, 1]} : vector<1x512xf32> to vector<1x128xf32>
    %127 = arith.mulf %124, %112 : vector<1x128xf32>
    %128 = arith.mulf %123, %125 : vector<1x128xf32>
    %129 = arith.addf %127, %128 : vector<1x128xf32>
    %130 = math.tanh %129 : vector<1x128xf32>
    %131 = arith.mulf %126, %130 : vector<1x128xf32>
    %c7_i32 = arith.constant 7 : i32
    %132 = arith.index_cast %c7_i32 : i32 to index
    %c0_42 = arith.constant 0 : index
    %133 = vector.load %arg11[%132, %c0_42] : memref<8x512xf32, #tpu.memory_space<vmem>>, vector<1x512xf32>
    %c0_43 = arith.constant 0 : index
    %c0_44 = arith.constant 0 : index
    %134 = vector.load %arg2[%c0_43, %c0_44] : memref<128x512xf32, #tpu.memory_space<vmem>>, vector<128x512xf32>
    %cst_45 = arith.constant dense<0.000000e+00> : vector<1x512xf32>
    %135 = tpu.matmul %131, %134, %cst_45 {dimension_numbers = #tpu.dot_dimension_numbers<[1], [0], [0], [1], [0, 0, 1, 1], [], []>} : vector<1x128xf32>, vector<128x512xf32>, vector<1x512xf32> -> vector<1x512xf32>
    %136 = arith.addf %133, %135 : vector<1x512xf32>
    %137 = math.tanh %136 : vector<1x512xf32>
    %138 = arith.mulf %9, %137 : vector<1x512xf32>
    %139 = arith.addf %138, %10 : vector<1x512xf32>
    %140 = vector.extract_strided_slice %139 {offsets = [0, 0], sizes = [1, 128], strides = [1, 1]} : vector<1x512xf32> to vector<1x128xf32>
    %141 = vector.extract_strided_slice %139 {offsets = [0, 128], sizes = [1, 128], strides = [1, 1]} : vector<1x512xf32> to vector<1x128xf32>
    %142 = vector.extract_strided_slice %139 {offsets = [0, 256], sizes = [1, 128], strides = [1, 1]} : vector<1x512xf32> to vector<1x128xf32>
    %143 = vector.extract_strided_slice %139 {offsets = [0, 384], sizes = [1, 128], strides = [1, 1]} : vector<1x512xf32> to vector<1x128xf32>
    %144 = arith.mulf %141, %129 : vector<1x128xf32>
    %145 = arith.mulf %140, %142 : vector<1x128xf32>
    %146 = arith.addf %144, %145 : vector<1x128xf32>
    %147 = math.tanh %146 : vector<1x128xf32>
    %148 = arith.mulf %143, %147 : vector<1x128xf32>
    %c8_i32 = arith.constant 8 : i32
    %c0_46 = arith.constant 0 : index
    %c0_47 = arith.constant 0 : index
    %149 = vector.load %arg4[%c0_46, %c0_47] : memref<128x128xf32, #tpu.memory_space<vmem>>, vector<128x128xf32>
    %cst_48 = arith.constant dense<0.000000e+00> : vector<1x128xf32>
    %150 = tpu.matmul %148, %149, %cst_48 {dimension_numbers = #tpu.dot_dimension_numbers<[1], [0], [0], [1], [0, 0, 1, 1], [], []>} : vector<1x128xf32>, vector<128x128xf32>, vector<1x128xf32> -> vector<1x128xf32>
    %c0_49 = arith.constant 0 : index
    %c0_50 = arith.constant 0 : index
    %151 = vector.load %arg5[%c0_49, %c0_50] : memref<1x128xf32, #tpu.memory_space<vmem>>, vector<1x128xf32>
    %152 = arith.addf %150, %151 : vector<1x128xf32>
    %c0_51 = arith.constant 0 : index
    %c0_52 = arith.constant 0 : index
    %153 = vector.load %arg10[%c0_51, %c0_52] : memref<1x128xf32, #tpu.memory_space<vmem>>, vector<1x128xf32>
    tpu.vector_store %arg10[%c0_51, %c0_52], %152 {strides = array<i32>} : memref<1x128xf32, #tpu.memory_space<vmem>>, vector<1x128xf32>,
    return
  }
}

</mosaic_0001>

<bundles_post_ra>
// kernel: tpu_custom_call.1
= control target key start
LH: loop header
LB: loop body
LE: loop exit
PB: predicated region body
PF: predicated region fallthrough
CT: control target
= control target key end

     0   :  { %15 = vsyncpa [#allocation4], 0  ;;  %s2342_s0 = inlined_call_operand.vmem [shape: f32[8,1], index: 0, kind: input, shape index: {}]   ;;  %s2343_s1 = inlined_call_operand.vmem [shape: f32[1,512], index: 1, kind: input, shape index: {}]   ;;  %s2344_s2 = inlined_call_operand.hbm [shape: f32[128,512], index: 2, kind: input, shape index: {}]   ;;  %s2345_s3 = inlined_call_operand.vmem [shape: f32[1,512], index: 3, kind: input, shape index: {}]   ;;  %s2346_s4 = inlined_call_operand.hbm [shape: f32[128,128], index: 4, kind: input, shape index: {}]   ;;  %s2347_s5 = inlined_call_operand.hbm [shape: f32[1,128], index: 5, kind: input, shape index: {}]   ;;  %s2348_s6 = inlined_call_operand.hbm [shape: f32[1,128], index: 6, kind: input, shape index: {}]   ;;  %s2349_s7 = inlined_call_operand.hbm [shape: f32[1,128], index: 7, kind: input, shape index: {}]   ;;  %s2350_s8 = inlined_call_operand.vmem [shape: f32[1,512], index: 8, kind: input, shape index: {}]   ;;  %s2351_s9 = inlined_call_operand.vmem [shape: f32[1,512], index: 9, kind: input, shape index: {}]   ;;  %s2352_s10 = inlined_call_operand.hbm [shape: f32[1,128], index: 10, kind: output, shape index: {}]  }
   0x1   :  { %16 = vsyncpa [#allocation7], 0 }
   0x2   :  { %17 = vsyncpa [#allocation10], 0  ;;  %s42_s15 = sshll.u32 %s2346_s4, 4  ;;  %s43_s15 = int_to_ptr.hbm [resolvable:$true] %s42_s15 }
   0x3   :  { %18 = vsyncpa [#allocation5], 0  ;;  %s1407_s16 = smov [#allocation6]   ;;  %s67_s20 = sshll.u32 %s2348_s6, 4  ;;  %s68_s20 = int_to_ptr.hbm [resolvable:$true] %s67_s20 }
   0x4   :  { %s44_s17 = sshll.u32 %s1407_s16, 4  ;;  %s1408_s21 = smov 128   ;;  %s45_s17 = int_to_ptr.vmem [resolvable:$true] %s44_s17 }
   0x5   :  { %s1409_s22 = smov 8   ;;  %s1410_s23 = smov [#allocation9]  }
   0x6   :  { %50 = dma.hbm_to_vmem [thread:$0]  %s43_s15, 2048, %s45_s17, [#allocation7], %s1408_s21, %s1408_s21, %s1409_s22  }
   0x7   :  { %s69_s24 = sshll.u32 %s1410_s23, 4  ;;  %s27_s27 = sshll.u32 %s2344_s2, 4  ;;  %s70_s24 = int_to_ptr.vmem [resolvable:$true] %s69_s24  ;;  %s28_s27 = int_to_ptr.hbm [resolvable:$true] %s27_s27 }
   0x8   :  { %72 = dma.hbm_to_vmem [thread:$0]  %s68_s20, 16, %s70_s24, [#allocation10]  }
   0x9   :  { %s1411_s4 = smov [#allocation3]   ;;  %s56_s6 = sshll.u32 %s2347_s5, 4  ;;  %s57_s6 = int_to_ptr.hbm [resolvable:$true] %s56_s6 }
   0xa   :  { %s29_s28 = sshll.u32 %s1411_s4, 4  ;;  %s1412_s11 = smov 512   ;;  %s30_s28 = int_to_ptr.vmem [resolvable:$true] %s29_s28 }
   0xb   :  { %s1413_s12 = smov 32   ;;  %s1414_s13 = smov [#allocation8]  }
   0xc   :  { %35 = dma.hbm_to_vmem [thread:$0]  %s28_s27, 8192, %s30_s28, [#allocation4], %s1412_s11, %s1412_s11, %s1413_s12  }
   0xd   :  { %s58_s14 = sshll.u32 %s1414_s13, 4  ;;  %s78_s2 = sshll.u32 %s2349_s7, 4  ;;  %s59_s14 = int_to_ptr.vmem [resolvable:$true] %s58_s14  ;;  %s79_s2 = int_to_ptr.hbm [resolvable:$true] %s78_s2 }
   0xe   :  { %61 = dma.hbm_to_vmem [thread:$0]  %s57_s6, 16, %s59_s14, [#allocation7]  }
   0xf   :  { %s1415_s17 = smov [#allocation11]  }
  0x10   :  { %s80_s18 = sshll.u32 %s1415_s17, 4  ;;  %s81_s18 = int_to_ptr.vmem [resolvable:$true] %s80_s18 }
  0x11   :  { %83 = dma.hbm_to_vmem [thread:$0]  %s79_s2, 16, %s81_s18, [#allocation10]  }
  0x12   :  { %1399 = dma.done.wait [#allocation4], 8192  }
  0x13   :  { %1400 = vsyncadd [#allocation4], 4294959104 }
  0x14   :  { %1401 = dma.done.wait [#allocation7], 2064  }
  0x15   :  { %1402 = vsyncadd [#allocation7], 4294965232 }
  0x16   :  { %1403 = dma.done.wait [#allocation10], 32  }
  0x17   :  { %1404 = vsyncadd [#allocation10], 4294967264  ;;  %v1488_v0 = vld [vmem:[#allocation3 + $0x1f0] sm:$0xff]  ;;  %v1490_v1 = vld [vmem:[#allocation3 + $0x1f8] sm:$0xff]  ;;  %vm302_vm0 = vcmask 1040384   ;;  %vm304_vm1 = vcmask 1042434  }
  0x18   :  { %v1492_v2 = vld [vmem:[#allocation3 + $0x1d0] sm:$0xff]  ;;  %255 = vmatpush.msra.mxu2 %v1488_v0  ;;  %275 = vmatpush.msra.mxu3 %v1490_v1  ;;  %v1496_v3 = vld [vmem:[#allocation3 + $0x1d8] sm:$0xff]  ;;  %v1502_v6 = vld [vmem:[#allocation3 + $0x1e8] sm:$0xff]  ;;  %vm306_vm2 = vcmask 1041408   ;;  %s1417_s4 = smov [#allocation12]   ;;  %s1133_s30 = sshll.u32 %s2352_s10, 4  ;;  %s1134_s30 = int_to_ptr.hbm [resolvable:$true] %s1133_s30 }
  0x19   :  { %v1498_v4 = vld [vmem:[#allocation3 + $0x1b0] sm:$0xff]  ;;  %v1500_v5 = vld [vmem:[#allocation3 + $0x1b8] sm:$0xff]  ;;  %v1506_v7 = vld [vmem:[#allocation3 + $0x1e0] sm:$0xff]  ;;  %235 = vmatpush.msra.mxu1 %v1502_v6  ;;  %s1131_s28 = sshll.u32 %s1417_s4, 4  ;;  %s1132_s28 = int_to_ptr.vmem [resolvable:$true] %s1131_s28 }
  0x1a   :  { %256 = vmatpush.msra.mxu2 %v1492_v2  ;;  %276 = vmatpush.msra.mxu3 %v1496_v3  ;;  %v1508_v8 = vld [vmem:[#allocation3 + $0x1c8] sm:$0xff]  ;;  %v1511_v9 = vld [vmem:[#allocation3 + $0x190] sm:$0xff]  ;;  %v1513_v10 = vld [vmem:[#allocation3 + $0x198] sm:$0xff] }
  0x1b   :  { %215 = vmatpush.msra.mxu0 %v1506_v7  ;;  %v1516_v11 = vld [vmem:[#allocation3 + $0x1c0] sm:$0xff]  ;;  %v1520_v12 = vld [vmem:[#allocation3 + $0x1a8] sm:$0xff]  ;;  %236 = vmatpush.msra.mxu1 %v1508_v8  ;;  %v1525_v14 = vld [vmem:[#allocation3 + $0x170] sm:$0xff] }
  0x1c   :  { %257 = vmatpush.msra.mxu2 %v1498_v4  ;;  %277 = vmatpush.msra.mxu3 %v1500_v5  ;;  %v1522_v13 = vld [vmem:[#allocation3 + $0x1a0] sm:$0xff]  ;;  %v1527_v15 = vld [vmem:[#allocation3 + $0x178] sm:$0xff]  ;;  %v1532_v16 = vld [vmem:[#allocation3 + $0x188] sm:$0xff] }
  0x1d   :  { %216 = vmatpush.msra.mxu0 %v1516_v11  ;;  %v1534_v17 = vld [vmem:[#allocation3 + $0x180] sm:$0xff]  ;;  %237 = vmatpush.msra.mxu1 %v1520_v12  ;;  %v1537_v18 = vld [vmem:[#allocation3 + $0x150] sm:$0xff]  ;;  %v1539_v19 = vld [vmem:[#allocation3 + $0x158] sm:$0xff] }
  0x1e   :  { %258 = vmatpush.msra.mxu2 %v1511_v9  ;;  %278 = vmatpush.msra.mxu3 %v1513_v10  ;;  %v1544_v20 = vld [vmem:[#allocation3 + $0x168] sm:$0xff]  ;;  %v1546_v21 = vld [vmem:[#allocation3 + $0x160] sm:$0xff]  ;;  %v1549_v22 = vld [vmem:[#allocation3 + $0x130] sm:$0xff] }
  0x1f   :  { %217 = vmatpush.msra.mxu0 %v1522_v13  ;;  %238 = vmatpush.msra.mxu1 %v1532_v16  ;;  %v1551_v23 = vld [vmem:[#allocation3 + $0x138] sm:$0xff]  ;;  %v1556_v24 = vld [vmem:[#allocation3 + $0x148] sm:$0xff]  ;;  %v1558_v25 = vld [vmem:[#allocation3 + $0x140] sm:$0xff] }
  0x20   :  { %259 = vmatpush.msra.mxu2 %v1525_v14  ;;  %279 = vmatpush.msra.mxu3 %v1527_v15  ;;  %v1561_v26 = vld [vmem:[#allocation3 + $0x110] sm:$0xff]  ;;  %v1563_v27 = vld [vmem:[#allocation3 + $0x118] sm:$0xff]  ;;  %v1568_v28 = vld [vmem:[#allocation3 + $0x128] sm:$0xff] }
  0x21   :  { %218 = vmatpush.msra.mxu0 %v1534_v17  ;;  %239 = vmatpush.msra.mxu1 %v1544_v20  ;;  %v1570_v29 = vld [vmem:[#allocation3 + $0x120] sm:$0xff]  ;;  %v1573_v30 = vld [vmem:[#allocation3 + $0xf0] sm:$0xff]  ;;  %v1575_v31 = vld [vmem:[#allocation3 + $0xf8] sm:$0xff] }
  0x22   :  { %260 = vmatpush.msra.mxu2 %v1537_v18  ;;  %280 = vmatpush.msra.mxu3 %v1539_v19  ;;  %v1580_v32 = vld [vmem:[#allocation3 + $0x108] sm:$0xff]  ;;  %v1582_v33 = vld [vmem:[#allocation3 + $0x100] sm:$0xff]  ;;  %v1585_v34 = vld [vmem:[#allocation3 + $0xd0] sm:$0xff] }
  0x23   :  { %219 = vmatpush.msra.mxu0 %v1546_v21  ;;  %240 = vmatpush.msra.mxu1 %v1556_v24  ;;  %v1587_v35 = vld [vmem:[#allocation3 + $0xd8] sm:$0xff]  ;;  %v1592_v36 = vld [vmem:[#allocation3 + $0xe8] sm:$0xff]  ;;  %v1594_v37 = vld [vmem:[#allocation3 + $0xe0] sm:$0xff] }
  0x24   :  { %261 = vmatpush.msra.mxu2 %v1549_v22  ;;  %281 = vmatpush.msra.mxu3 %v1551_v23  ;;  %v1597_v38 = vld [vmem:[#allocation3 + $0xb0] sm:$0xff]  ;;  %v1599_v39 = vld [vmem:[#allocation3 + $0xb8] sm:$0xff]  ;;  %v1604_v40 = vld [vmem:[#allocation3 + $0xc8] sm:$0xff] }
  0x25   :  { %220 = vmatpush.msra.mxu0 %v1558_v25  ;;  %241 = vmatpush.msra.mxu1 %v1568_v28  ;;  %2422 = vst [vmem:[#allocation17_spill] sm:$0xff] %v1597_v38  ;;  %v1606_v41 = vld [vmem:[#allocation3 + $0xc0] sm:$0xff]  ;;  %v1609_v42 = vld [vmem:[#allocation3 + $0x90] sm:$0xff]  ;;  %v1611_v43 = vld [vmem:[#allocation3 + $0x98] sm:$0xff] }
  0x26   :  { %262 = vmatpush.msra.mxu2 %v1561_v26  ;;  %282 = vmatpush.msra.mxu3 %v1563_v27  ;;  %2423 = vst [vmem:[#allocation18_spill] sm:$0xff] %v1599_v39  ;;  %v1616_v44 = vld [vmem:[#allocation3 + $0xa8] sm:$0xff]  ;;  %v1618_v45 = vld [vmem:[#allocation3 + $0xa0] sm:$0xff]  ;;  %v1621_v46 = vld [vmem:[#allocation3 + $0x70] sm:$0xff] }
  0x27   :  { %221 = vmatpush.msra.mxu0 %v1570_v29  ;;  %242 = vmatpush.msra.mxu1 %v1580_v32  ;;  %2424 = vst [vmem:[#allocation19_spill] sm:$0xff] %v1609_v42  ;;  %v1623_v47 = vld [vmem:[#allocation3 + $0x78] sm:$0xff]  ;;  %v1628_v48 = vld [vmem:[#allocation3 + $0x88] sm:$0xff]  ;;  %v1630_v49 = vld [vmem:[#allocation3 + $0x80] sm:$0xff] }
  0x28   :  { %263 = vmatpush.msra.mxu2 %v1573_v30  ;;  %283 = vmatpush.msra.mxu3 %v1575_v31  ;;  %2425 = vst [vmem:[#allocation20_spill] sm:$0xff] %v1611_v43  ;;  %v1633_v50 = vld [vmem:[#allocation3 + $0x50] sm:$0xff]  ;;  %v1635_v51 = vld [vmem:[#allocation3 + $0x58] sm:$0xff]  ;;  %v1640_v52 = vld [vmem:[#allocation3 + $0x68] sm:$0xff] }
  0x29   :  { %222 = vmatpush.msra.mxu0 %v1582_v33  ;;  %243 = vmatpush.msra.mxu1 %v1592_v36  ;;  %2426 = vst [vmem:[#allocation21_spill] sm:$0xff] %v1616_v44  ;;  %v1642_v53 = vld [vmem:[#allocation3 + $0x60] sm:$0xff]  ;;  %v1645_v54 = vld [vmem:[#allocation3 + $0x30] sm:$0xff]  ;;  %v1647_v55 = vld [vmem:[#allocation3 + $0x38] sm:$0xff] }
  0x2a   :  { %264 = vmatpush.msra.mxu2 %v1585_v34  ;;  %284 = vmatpush.msra.mxu3 %v1587_v35  ;;  %2427 = vst [vmem:[#allocation22_spill] sm:$0xff] %v1621_v46  ;;  %v1652_v56 = vld [vmem:[#allocation3 + $0x48] sm:$0xff]  ;;  %v1654_v57 = vld [vmem:[#allocation3 + $0x40] sm:$0xff]  ;;  %v1657_v58 = vld [vmem:[#allocation3 + $0x10] sm:$0xff] }
  0x2b   :  { %223 = vmatpush.msra.mxu0 %v1594_v37  ;;  %244 = vmatpush.msra.mxu1 %v1604_v40  ;;  %2428 = vst [vmem:[#allocation23_spill] sm:$0xff] %v1623_v47  ;;  %v1659_v59 = vld [vmem:[#allocation3 + $0x18] sm:$0xff]  ;;  %v148_v60 = vld [vmem:[#allocation9] sm:$0x1]  ;;  %v1666_v61 = vld [vmem:[#allocation3 + $0x28] sm:$0xff] }
  0x2c   :  { %265 = vmatpush.msra.mxu2 %v1597_v38  ;;  %285 = vmatpush.msra.mxu3 %v1599_v39  ;;  %2429 = vst [vmem:[#allocation24_spill] sm:$0xff] %v1628_v48  ;;  %v1668_v62 = vld [vmem:[#allocation3 + $0x20] sm:$0xff]  ;;  %v1672_v63 = vld [vmem:[#allocation3 + $0x8] sm:$0xff] }
  0x2d   :  { %224 = vmatpush.msra.mxu0 %v1606_v41  ;;  %2430 = vst [vmem:[#allocation25_spill] sm:$0xff] %v1630_v49  ;;  %245 = vmatpush.msra.mxu1 %v1616_v44 }
  0x2e   :  { %266 = vmatpush.msra.mxu2 %v1609_v42  ;;  %286 = vmatpush.msra.mxu3 %v1611_v43  ;;  %2431 = vst [vmem:[#allocation26_spill] sm:$0xff] %v1633_v50 }
  0x2f   :  { %2432 = vst [vmem:[#allocation27_spill] sm:$0xff] %v1635_v51  ;;  %225 = vmatpush.msra.mxu0 %v1618_v45  ;;  %246 = vmatpush.msra.mxu1 %v1628_v48 }
  0x30   :  { %267 = vmatpush.msra.mxu2 %v1621_v46  ;;  %287 = vmatpush.msra.mxu3 %v1623_v47  ;;  %2433 = vst [vmem:[#allocation28_spill] sm:$0xff] %v1640_v52 }
  0x31   :  { %2434 = vst [vmem:[#allocation29_spill] sm:$0xff] %v1642_v53  ;;  %226 = vmatpush.msra.mxu0 %v1630_v49  ;;  %247 = vmatpush.msra.mxu1 %v1640_v52 }
  0x32   :  { %2435 = vst [vmem:[#allocation30_spill] sm:$0xff] %v1645_v54  ;;  %268 = vmatpush.msra.mxu2 %v1633_v50  ;;  %288 = vmatpush.msra.mxu3 %v1635_v51  ;;  %v108_v51 = vld [vmem:[%s2342_s0] sm:$0xff] }
  0x33   :  { %2436 = vst [vmem:[#allocation31_spill] sm:$0xff] %v1647_v55  ;;  %227 = vmatpush.msra.mxu0 %v1642_v53  ;;  %248 = vmatpush.msra.mxu1 %v1652_v56 }
  0x34   :  { %2437 = vst [vmem:[#allocation32_spill] sm:$0xff] %v1652_v56  ;;  %269 = vmatpush.msra.mxu2 %v1645_v54  ;;  %289 = vmatpush.msra.mxu3 %v1647_v55  ;;  %v1674_v54 = vld [vmem:[#allocation3] sm:$0xff]  ;;  %v1416_v55 = vmov 0  }
  0x35   :  { %2438 = vst [vmem:[#allocation33_spill] sm:$0xff] %v1654_v57  ;;  %228 = vmatpush.msra.mxu0 %v1654_v57  ;;  %249 = vmatpush.msra.mxu1 %v1666_v61 }
  0x36   :  { %2439 = vst [vmem:[#allocation34_spill] sm:$0xff] %v1657_v58  ;;  %270 = vmatpush.msra.mxu2 %v1657_v58  ;;  %290 = vmatpush.msra.mxu3 %v1659_v59 }
  0x37   :  { %2440 = vst [vmem:[#allocation35_spill] sm:$0xff] %v1659_v59  ;;  %271 = vmatmul.f32.vlgmr.msra.gmra.mxu2 %v148_v60  ;;  %291 = vmatmul.f32.vlgmr.msra.gmra.mxu3 %v148_v60 }
  0x38   :  { %2441 = vst [vmem:[#allocation36_spill] sm:$0xff] %v1666_v61  ;;  %229 = vmatpush.msra.mxu0 %v1668_v62  ;;  %1156 = vset.pattern.permute.xlu0 %v1416_v55 }
  0x39   :  { %2442 = vst [vmem:[#allocation37_spill] sm:$0xff] %v1668_v62  ;;  %367 = vmatpush.msrb.mxu2 %v1488_v0  ;;  %250 = vmatpush.msra.mxu1 %v1672_v63  ;;  %v2446_v55 = vld [vmem:[#allocation30_spill] sm:$0xff] }
  0x3a   :  { %2443 = vst [vmem:[#allocation38_spill] sm:$0xff] %v1672_v63  ;;  %230 = vmatpush.msra.mxu0 %v1674_v54  ;;  %251 = vmatmul.f32.vlgmr.msra.gmra.mxu1 %v148_v60 }
  0x3b   :  { %2444 = vst [vmem:[#allocation39_spill] sm:$0xff] %v1674_v54  ;;  %231 = vmatmul.f32.vlgmr.msra.gmra.mxu0 %v148_v60  ;;  %112 = vperm.xlu0 %1156, %v108_v51   ;;  %v2445_v51 = vld [vmem:[#allocation27_spill] sm:$0xff] }
  0x3c   :  { %327 = vmatpush.msrb.mxu0 %v1506_v7  ;;  %347 = vmatpush.msrb.mxu1 %v1502_v6  ;;  %v2447_v60 = vld [vmem:[#allocation31_spill] sm:$0xff] }
  0x3d   :  { %387 = vmatpush.msrb.mxu3 %v1490_v1  ;;  %368 = vmatpush.msrb.mxu2 %v1492_v2 }
  0x3e   :  { %328 = vmatpush.msrb.mxu0 %v1516_v11  ;;  %348 = vmatpush.msrb.mxu1 %v1508_v8 }
  0x3f   :  { %388 = vmatpush.msrb.mxu3 %v1496_v3  ;;  %369 = vmatpush.msrb.mxu2 %v1498_v4 }
  0x40   :  { %329 = vmatpush.msrb.mxu0 %v1522_v13  ;;  %349 = vmatpush.msrb.mxu1 %v1520_v12 }
  0x41   :  { %389 = vmatpush.msrb.mxu3 %v1500_v5  ;;  %370 = vmatpush.msrb.mxu2 %v1511_v9 }
  0x42   :  { %330 = vmatpush.msrb.mxu0 %v1534_v17  ;;  %350 = vmatpush.msrb.mxu1 %v1532_v16 }
  0x43   :  { %390 = vmatpush.msrb.mxu3 %v1513_v10  ;;  %371 = vmatpush.msrb.mxu2 %v1525_v14 }
  0x44   :  { %331 = vmatpush.msrb.mxu0 %v1546_v21  ;;  %351 = vmatpush.msrb.mxu1 %v1544_v20 }
  0x45   :  { %391 = vmatpush.msrb.mxu3 %v1527_v15  ;;  %372 = vmatpush.msrb.mxu2 %v1537_v18 }
  0x46   :  { %332 = vmatpush.msrb.mxu0 %v1558_v25  ;;  %352 = vmatpush.msrb.mxu1 %v1556_v24 }
  0x47   :  { %392 = vmatpush.msrb.mxu3 %v1539_v19  ;;  %373 = vmatpush.msrb.mxu2 %v1549_v22 }
  0x48   :  { %333 = vmatpush.msrb.mxu0 %v1570_v29  ;;  %353 = vmatpush.msrb.mxu1 %v1568_v28 }
  0x49   :  { %393 = vmatpush.msrb.mxu3 %v1551_v23  ;;  %374 = vmatpush.msrb.mxu2 %v1561_v26 }
  0x4a   :  { %334 = vmatpush.msrb.mxu0 %v1582_v33  ;;  %354 = vmatpush.msrb.mxu1 %v1580_v32 }
  0x4b   :  { %394 = vmatpush.msrb.mxu3 %v1563_v27  ;;  %375 = vmatpush.msrb.mxu2 %v1573_v30 }
  0x4c   :  { %335 = vmatpush.msrb.mxu0 %v1594_v37  ;;  %355 = vmatpush.msrb.mxu1 %v1592_v36 }
  0x4d   :  { %395 = vmatpush.msrb.mxu3 %v1575_v31  ;;  %376 = vmatpush.msrb.mxu2 %v1585_v34 }
  0x4e   :  { %336 = vmatpush.msrb.mxu0 %v1606_v41  ;;  %356 = vmatpush.msrb.mxu1 %v1604_v40 }
  0x4f   :  { %396 = vmatpush.msrb.mxu3 %v1587_v35  ;;  %377 = vmatpush.msrb.mxu2 %v1597_v38 }
  0x50   :  { %337 = vmatpush.msrb.mxu0 %v1618_v45  ;;  %357 = vmatpush.msrb.mxu1 %v1616_v44 }
  0x51   :  { %397 = vmatpush.msrb.mxu3 %v1599_v39  ;;  %378 = vmatpush.msrb.mxu2 %v1609_v42 }
  0x52   :  { %338 = vmatpush.msrb.mxu0 %v1630_v49  ;;  %358 = vmatpush.msrb.mxu1 %v1628_v48 }
  0x53   :  { %398 = vmatpush.msrb.mxu3 %v1611_v43  ;;  %379 = vmatpush.msrb.mxu2 %v1621_v46 }
  0x54   :  { %339 = vmatpush.msrb.mxu0 %v1642_v53  ;;  %359 = vmatpush.msrb.mxu1 %v1640_v52 }
  0x55   :  { %399 = vmatpush.msrb.mxu3 %v1623_v47  ;;  %380 = vmatpush.msrb.mxu2 %v1633_v50 }
  0x56   :  { %340 = vmatpush.msrb.mxu0 %v1654_v57  ;;  %360 = vmatpush.msrb.mxu1 %v1652_v56 }
  0x57   :  { %400 = vmatpush.msrb.mxu3 %v2445_v51  ;;  %381 = vmatpush.msrb.mxu2 %v2446_v55 }
  0x58   :  { %341 = vmatpush.msrb.mxu0 %v1668_v62  ;;  %361 = vmatpush.msrb.mxu1 %v1666_v61 }
  0x59   :  { %401 = vmatpush.msrb.mxu3 %v2447_v60  ;;  %382 = vmatpush.msrb.mxu2 %v1657_v58 }
  0x5a   :  { %342 = vmatpush.msrb.mxu0 %v1674_v54  ;;  %362 = vmatpush.msrb.mxu1 %v1672_v63 }
  0x5b   :  { %402 = vmatpush.msrb.mxu3 %v1659_v59  ;;  %476 = vmatpush.msra.mxu2 %v1488_v0 }
  0x5c   :  { %436 = vmatpush.msra.mxu0 %v1506_v7  ;;  %456 = vmatpush.msra.mxu1 %v1502_v6 }
  0x5d   :  { %496 = vmatpush.msra.mxu3 %v1490_v1  ;;  %477 = vmatpush.msra.mxu2 %v1492_v2 }
  0x5e   :  { %437 = vmatpush.msra.mxu0 %v1516_v11  ;;  %457 = vmatpush.msra.mxu1 %v1508_v8 }
  0x5f   :  { %497 = vmatpush.msra.mxu3 %v1496_v3  ;;  %478 = vmatpush.msra.mxu2 %v1498_v4 }
  0x60   :  { %438 = vmatpush.msra.mxu0 %v1522_v13  ;;  %458 = vmatpush.msra.mxu1 %v1520_v12 }
  0x61   :  { %498 = vmatpush.msra.mxu3 %v1500_v5  ;;  %479 = vmatpush.msra.mxu2 %v1511_v9 }
  0x62   :  { %439 = vmatpush.msra.mxu0 %v1534_v17  ;;  %459 = vmatpush.msra.mxu1 %v1532_v16 }
  0x63   :  { %499 = vmatpush.msra.mxu3 %v1513_v10  ;;  %480 = vmatpush.msra.mxu2 %v1525_v14 }
  0x64   :  { %440 = vmatpush.msra.mxu0 %v1546_v21  ;;  %460 = vmatpush.msra.mxu1 %v1544_v20 }
  0x65   :  { %500 = vmatpush.msra.mxu3 %v1527_v15  ;;  %481 = vmatpush.msra.mxu2 %v1537_v18 }
  0x66   :  { %441 = vmatpush.msra.mxu0 %v1558_v25  ;;  %461 = vmatpush.msra.mxu1 %v1556_v24 }
  0x67   :  { %501 = vmatpush.msra.mxu3 %v1539_v19  ;;  %482 = vmatpush.msra.mxu2 %v1549_v22 }
  0x68   :  { %442 = vmatpush.msra.mxu0 %v1570_v29  ;;  %462 = vmatpush.msra.mxu1 %v1568_v28 }
  0x69   :  { %502 = vmatpush.msra.mxu3 %v1551_v23  ;;  %483 = vmatpush.msra.mxu2 %v1561_v26 }
  0x6a   :  { %443 = vmatpush.msra.mxu0 %v1582_v33  ;;  %463 = vmatpush.msra.mxu1 %v1580_v32 }
  0x6b   :  { %503 = vmatpush.msra.mxu3 %v1563_v27  ;;  %484 = vmatpush.msra.mxu2 %v1573_v30 }
  0x6c   :  { %444 = vmatpush.msra.mxu0 %v1594_v37  ;;  %464 = vmatpush.msra.mxu1 %v1592_v36 }
  0x6d   :  { %504 = vmatpush.msra.mxu3 %v1575_v31  ;;  %485 = vmatpush.msra.mxu2 %v1585_v34 }
  0x6e   :  { %445 = vmatpush.msra.mxu0 %v1606_v41  ;;  %465 = vmatpush.msra.mxu1 %v1604_v40 }
  0x6f   :  { %505 = vmatpush.msra.mxu3 %v1587_v35  ;;  %486 = vmatpush.msra.mxu2 %v1597_v38 }
  0x70   :  { %446 = vmatpush.msra.mxu0 %v1618_v45  ;;  %466 = vmatpush.msra.mxu1 %v1616_v44 }
  0x71   :  { %506 = vmatpush.msra.mxu3 %v1599_v39  ;;  %487 = vmatpush.msra.mxu2 %v1609_v42 }
  0x72   :  { %447 = vmatpush.msra.mxu0 %v1630_v49  ;;  %467 = vmatpush.msra.mxu1 %v1628_v48 }
  0x73   :  { %507 = vmatpush.msra.mxu3 %v1611_v43  ;;  %488 = vmatpush.msra.mxu2 %v1621_v46 }
  0x74   :  { %448 = vmatpush.msra.mxu0 %v1642_v53  ;;  %468 = vmatpush.msra.mxu1 %v1640_v52 }
  0x75   :  { %508 = vmatpush.msra.mxu3 %v1623_v47  ;;  %489 = vmatpush.msra.mxu2 %v1633_v50 }
  0x76   :  { %449 = vmatpush.msra.mxu0 %v1654_v57  ;;  %469 = vmatpush.msra.mxu1 %v1652_v56 }
  0x77   :  { %509 = vmatpush.msra.mxu3 %v2445_v51  ;;  %490 = vmatpush.msra.mxu2 %v2446_v55  ;;  %v109_v51 = vld [vmem:[%s2343_s1] sm:$0xf] }
  0x78   :  { %450 = vmatpush.msra.mxu0 %v1668_v62  ;;  %470 = vmatpush.msra.mxu1 %v1666_v61  ;;  %v128_v61 = vld [vmem:[%s2345_s3] sm:$0xf]  ;;  %v116_v62 = vperm.slane %v109_v51, 0  ;;  %v117_v55 = vperm.slane %v109_v51, 1  ;;  %v118_v50 = vperm.slane %v109_v51, 2 }
  0x79   :  { %510 = vmatpush.msra.mxu3 %v2447_v60  ;;  %491 = vmatpush.msra.mxu2 %v1657_v58  ;;  %v119_v60 = vperm.slane %v109_v51, 3  ;;  %v130_v56 = vperm.slane %v128_v61, 0  ;;  %v132_v57 = vperm.slane %v128_v61, 2 }
  0x7a   :  { %451 = vmatpush.msra.mxu0 %v1674_v54  ;;  %471 = vmatpush.msra.mxu1 %v1672_v63  ;;  %v131_v54 = vperm.slane %v128_v61, 1  ;;  %v133_v63 = vperm.slane %v128_v61, 3 }
  0x7b   :  { %511 = vmatpush.msra.mxu3 %v1659_v59 }
  0xad   :  { %v113_v47 = vpop.permute.xlu0 %112 }
  0xae   :  { %v124_v58 = vmul.f32 %v116_v62, %v113_v47  ;;  %v125_v46 = vmul.f32 %v117_v55, %v113_v47  ;;  %v126_v59 = vmul.f32 %v118_v50, %v113_v47  ;;  %v127_v52 = vmul.f32 %v119_v60, %v113_v47  ;;  %v2448_v60 = vld [vmem:[#allocation21_spill] sm:$0xff] }
  0xb0   :  { %v138_v53 = vadd.f32 %v130_v56, %v124_v58  ;;  %v139_v43 = vadd.f32 %v131_v54, %v125_v46  ;;  %v140_v42 = vadd.f32 %v132_v57, %v126_v59  ;;  %v141_v48 = vadd.f32 %v133_v63, %v127_v52 }
  0xb2   :  { %142 = vst [vmem:[#allocation2] sm:$0xff] %v138_v53 }
  0xb3   :  { %143 = vst [vmem:[#allocation2 + $0x8] sm:$0xff] %v139_v43 }
  0xb4   :  { %144 = vst [vmem:[#allocation2 + $0x10] sm:$0xff] %v140_v42  ;;  %v1823_v42 = vld [vmem:[%s2350_s8] sm:$0xf] }
  0xb5   :  { %145 = vst [vmem:[#allocation2 + $0x18] sm:$0xff] %v141_v48 }
  0xb7   :  { %v252_v49 = vpop.f32.mrf.mxu1 }
  0xb8   :  { %v232_v39 = vpop.f32.mrf.mxu0  ;;  %v299_v51 = vrot.slane %v252_v49, 7  ;;  %v149_v49 = vld [vmem:[#allocation11] sm:$0x1] }
  0xba   :  { %v272_v38 = vpop.f32.mrf.mxu2  ;;  %v292_v44 = vpop.f32.mrf.mxu3  ;;  %v303_v50 = vsel %vm302_vm0, %v232_v39, %v299_v51  ;;  %v2449_v51 = vld [vmem:[#allocation17_spill] sm:$0xff] }
  0xbb   :  { %v300_v61 = vrot.slane %v272_v38, 6  ;;  %v301_v62 = vrot.slane %v292_v44, 5  ;;  %v1828_v38 = vld [vmem:[%s2351_s9] sm:$0xf] }
  0xbc   :  { %v150_v47 = vld [vmem:[#allocation2] ss:$8 sm:$0xf] }
  0xbd   :  { %v305_v46 = vsel %vm304_vm1, %v300_v61, %v301_v62  ;;  %v2450_v61 = vld [vmem:[#allocation18_spill] sm:$0xff]  ;;  %v2451_v62 = vld [vmem:[#allocation25_spill] sm:$0xff] }
  0xbe   :  { %v307_v52 = vsel %vm306_vm2, %v303_v50, %v305_v46  ;;  %v2452_v50 = vld [vmem:[#allocation24_spill] sm:$0xff]  ;;  %v2453_v46 = vld [vmem:[#allocation19_spill] sm:$0xff] }
  0xbf   :  { %v309_v43 = vadd.f32 %v307_v52, %v150_v47  ;;  %v2454_v47 = vld [vmem:[#allocation20_spill] sm:$0xff]  ;;  %v2455_v52 = vld [vmem:[#allocation29_spill] sm:$0xff] }
  0xc1   :  { %1157 = vtanh.f32 %v309_v43  ;;  %v2456_v43 = vld [vmem:[#allocation28_spill] sm:$0xff] }
  0xc7   :  { %v1158_v48 = vpop.eup %1157 }
  0xc8   :  { %v311_v39 = vmul.f32 %v1158_v48, %v1823_v42  ;;  %v2457_v48 = vld [vmem:[#allocation22_spill] sm:$0xff] }
  0xca   :  { %v312_v44 = vadd.f32 %v311_v39, %v1828_v38  ;;  %v2458_v39 = vld [vmem:[#allocation23_spill] sm:$0xff] }
  0xcc   :  { %v314_v53 = vrot.slane %v312_v44, 1  ;;  %v317_v54 = vrot.slane %v312_v44, 2  ;;  %v322_v59 = vrot.slane %v312_v44, 3 }
  0xce   :  { %v316_v56 = vmul.f32 %v314_v53, %v149_v49  ;;  %v319_v57 = vmul.f32 %v317_v54, %v312_v44  ;;  %v2459_v44 = vld [vmem:[#allocation33_spill] sm:$0xff]  ;;  %v2460_v49 = vld [vmem:[#allocation32_spill] sm:$0xff]  ;;  %v2461_v53 = vld [vmem:[#allocation26_spill] sm:$0xff] }
  0xcf   :  { %v2462_v54 = vld [vmem:[#allocation27_spill] sm:$0xff] }
  0xd0   :  { %v1832_v58 = vadd.f32 %v319_v57, %v316_v56  ;;  %v2463_v56 = vld [vmem:[#allocation37_spill] sm:$0xff]  ;;  %v2464_v57 = vld [vmem:[#allocation36_spill] sm:$0xff] }
  0xd2   :  { %1159 = vtanh.f32 %v1832_v58 }
  0xd8   :  { %v1160_v63 = vpop.eup %1159 }
  0xd9   :  { %v324_v55 = vmul.f32 %v1160_v63, %v322_v59  ;;  %v2465_v59 = vld [vmem:[#allocation30_spill] sm:$0xff]  ;;  %v2466_v63 = vld [vmem:[#allocation31_spill] sm:$0xff] }
  0xdb   :  { %343 = vmatmul.f32.vlgmr.msrb.gmra.mxu0 %v324_v55  ;;  %363 = vmatmul.f32.vlgmr.msrb.gmra.mxu1 %v324_v55 }
  0xdc   :  { %383 = vmatmul.f32.vlgmr.msrb.gmra.mxu2 %v324_v55  ;;  %403 = vmatmul.f32.vlgmr.msrb.gmra.mxu3 %v324_v55  ;;  %v2467_v55 = vld [vmem:[#allocation39_spill] sm:$0xff] }
  0xdd   :  { %545 = vmatpush.msrb.mxu0 %v1506_v7  ;;  %565 = vmatpush.msrb.mxu1 %v1502_v6 }
  0xde   :  { %585 = vmatpush.msrb.mxu2 %v1488_v0  ;;  %605 = vmatpush.msrb.mxu3 %v1490_v1 }
  0xdf   :  { %546 = vmatpush.msrb.mxu0 %v1516_v11  ;;  %566 = vmatpush.msrb.mxu1 %v1508_v8 }
  0xe0   :  { %586 = vmatpush.msrb.mxu2 %v1492_v2  ;;  %606 = vmatpush.msrb.mxu3 %v1496_v3 }
  0xe1   :  { %547 = vmatpush.msrb.mxu0 %v1522_v13  ;;  %567 = vmatpush.msrb.mxu1 %v1520_v12 }
  0xe2   :  { %587 = vmatpush.msrb.mxu2 %v1498_v4  ;;  %607 = vmatpush.msrb.mxu3 %v1500_v5 }
  0xe3   :  { %548 = vmatpush.msrb.mxu0 %v1534_v17  ;;  %568 = vmatpush.msrb.mxu1 %v1532_v16 }
  0xe4   :  { %588 = vmatpush.msrb.mxu2 %v1511_v9  ;;  %608 = vmatpush.msrb.mxu3 %v1513_v10 }
  0xe5   :  { %549 = vmatpush.msrb.mxu0 %v1546_v21  ;;  %569 = vmatpush.msrb.mxu1 %v1544_v20 }
  0xe6   :  { %589 = vmatpush.msrb.mxu2 %v1525_v14  ;;  %609 = vmatpush.msrb.mxu3 %v1527_v15 }
  0xe7   :  { %550 = vmatpush.msrb.mxu0 %v1558_v25  ;;  %570 = vmatpush.msrb.mxu1 %v1556_v24 }
  0xe8   :  { %590 = vmatpush.msrb.mxu2 %v1537_v18  ;;  %610 = vmatpush.msrb.mxu3 %v1539_v19 }
  0xe9   :  { %551 = vmatpush.msrb.mxu0 %v1570_v29  ;;  %571 = vmatpush.msrb.mxu1 %v1568_v28 }
  0xea   :  { %591 = vmatpush.msrb.mxu2 %v1549_v22  ;;  %611 = vmatpush.msrb.mxu3 %v1551_v23 }
  0xeb   :  { %552 = vmatpush.msrb.mxu0 %v1582_v33  ;;  %572 = vmatpush.msrb.mxu1 %v1580_v32 }
  0xec   :  { %592 = vmatpush.msrb.mxu2 %v1561_v26  ;;  %612 = vmatpush.msrb.mxu3 %v1563_v27 }
  0xed   :  { %553 = vmatpush.msrb.mxu0 %v1594_v37  ;;  %573 = vmatpush.msrb.mxu1 %v1592_v36 }
  0xee   :  { %593 = vmatpush.msrb.mxu2 %v1573_v30  ;;  %613 = vmatpush.msrb.mxu3 %v1575_v31 }
  0xef   :  { %554 = vmatpush.msrb.mxu0 %v1606_v41  ;;  %574 = vmatpush.msrb.mxu1 %v1604_v40 }
  0xf0   :  { %594 = vmatpush.msrb.mxu2 %v1585_v34  ;;  %614 = vmatpush.msrb.mxu3 %v1587_v35 }
  0xf1   :  { %555 = vmatpush.msrb.mxu0 %v1618_v45  ;;  %575 = vmatpush.msrb.mxu1 %v2448_v60 }
  0xf2   :  { %595 = vmatpush.msrb.mxu2 %v2449_v51  ;;  %615 = vmatpush.msrb.mxu3 %v2450_v61 }
  0xf3   :  { %556 = vmatpush.msrb.mxu0 %v2451_v62  ;;  %576 = vmatpush.msrb.mxu1 %v2452_v50 }
  0xf4   :  { %596 = vmatpush.msrb.mxu2 %v2453_v46  ;;  %616 = vmatpush.msrb.mxu3 %v2454_v47 }
  0xf5   :  { %557 = vmatpush.msrb.mxu0 %v2455_v52  ;;  %577 = vmatpush.msrb.mxu1 %v2456_v43 }
  0xf6   :  { %597 = vmatpush.msrb.mxu2 %v2457_v48  ;;  %617 = vmatpush.msrb.mxu3 %v2458_v39  ;;  %v2468_v48 = vld [vmem:[#allocation38_spill] sm:$0xff] }
  0xf7   :  { %558 = vmatpush.msrb.mxu0 %v2459_v44  ;;  %578 = vmatpush.msrb.mxu1 %v2460_v49  ;;  %v2469_v39 = vld [vmem:[#allocation34_spill] sm:$0xff]  ;;  %v2470_v44 = vld [vmem:[#allocation35_spill] sm:$0xff] }
  0xf8   :  { %598 = vmatpush.msrb.mxu2 %v2461_v53  ;;  %618 = vmatpush.msrb.mxu3 %v2462_v54 }
  0xf9   :  { %559 = vmatpush.msrb.mxu0 %v2463_v56  ;;  %579 = vmatpush.msrb.mxu1 %v2464_v57 }
  0xfa   :  { %599 = vmatpush.msrb.mxu2 %v2465_v59  ;;  %619 = vmatpush.msrb.mxu3 %v2466_v63  ;;  %v326_v63 = vld [vmem:[#allocation2 + $0x1] ss:$8 sm:$0xf] }
  0xfb   :  { %560 = vmatpush.msrb.mxu0 %v2467_v55  ;;  %580 = vmatpush.msrb.mxu1 %v2468_v48 }
  0xfc   :  { %600 = vmatpush.msrb.mxu2 %v2469_v39  ;;  %620 = vmatpush.msrb.mxu3 %v2470_v44 }
 0x158   :  { %v364_v49 = vpop.f32.mrf.mxu1  ;;  %v344_v47 = vpop.f32.mrf.mxu0 }
 0x159   :  { %v411_v53 = vrot.slane %v364_v49, 7 }
 0x15b   :  { %v414_v57 = vsel %vm302_vm0, %v344_v47, %v411_v53 }
 0x15f   :  { %v384_v43 = vpop.f32.mrf.mxu2  ;;  %v404_v54 = vpop.f32.mrf.mxu3 }
 0x160   :  { %v412_v52 = vrot.slane %v384_v43, 6  ;;  %v413_v56 = vrot.slane %v404_v54, 5 }
 0x162   :  { %v415_v59 = vsel %vm304_vm1, %v412_v52, %v413_v56  ;;  %v2480_v56 = vld [vmem:[#allocation32_spill] sm:$0xff] }
 0x163   :  { %v416_v55 = vsel %vm306_vm2, %v414_v57, %v415_v59  ;;  %v2481_v57 = vld [vmem:[#allocation26_spill] sm:$0xff]  ;;  %v2482_v59 = vld [vmem:[#allocation27_spill] sm:$0xff] }
 0x164   :  { %v418_v46 = vadd.f32 %v416_v55, %v326_v63  ;;  %v2483_v63 = vld [vmem:[#allocation37_spill] sm:$0xff]  ;;  %v2484_v55 = vld [vmem:[#allocation36_spill] sm:$0xff] }
 0x166   :  { %1161 = vtanh.f32 %v418_v46  ;;  %v2476_v46 = vld [vmem:[#allocation28_spill] sm:$0xff] }
 0x16c   :  { %v1162_v48 = vpop.eup %1161 }
 0x16d   :  { %v420_v39 = vmul.f32 %v1162_v48, %v1823_v42  ;;  %v2477_v48 = vld [vmem:[#allocation22_spill] sm:$0xff] }
 0x16f   :  { %v421_v44 = vadd.f32 %v420_v39, %v1828_v38  ;;  %v2478_v39 = vld [vmem:[#allocation23_spill] sm:$0xff] }
 0x171   :  { %v423_v49 = vrot.slane %v421_v44, 1  ;;  %v426_v50 = vrot.slane %v421_v44, 2  ;;  %v431_v47 = vrot.slane %v421_v44, 3 }
 0x173   :  { %v425_v43 = vmul.f32 %v423_v49, %v1832_v58  ;;  %v428_v54 = vmul.f32 %v426_v50, %v421_v44  ;;  %v2474_v58 = vld [vmem:[#allocation20_spill] sm:$0xff]  ;;  %v2475_v50 = vld [vmem:[#allocation29_spill] sm:$0xff]  ;;  %v2485_v49 = vld [vmem:[#allocation30_spill] sm:$0xff] }
 0x174   :  { %v2479_v44 = vld [vmem:[#allocation33_spill] sm:$0xff] }
 0x175   :  { %v1905_v62 = vadd.f32 %v428_v54, %v425_v43  ;;  %v2486_v43 = vld [vmem:[#allocation31_spill] sm:$0xff] }
 0x176   :  { %v2487_v54 = vld [vmem:[#allocation39_spill] sm:$0xff] }
 0x177   :  { %1163 = vtanh.f32 %v1905_v62 }
 0x17d   :  { %v1164_v52 = vpop.eup %1163 }
 0x17e   :  { %v433_v53 = vmul.f32 %v1164_v52, %v431_v47  ;;  %v2488_v47 = vld [vmem:[#allocation38_spill] sm:$0xff] }
 0x17f   :  { %v2489_v52 = vld [vmem:[#allocation34_spill] sm:$0xff] }
 0x180   :  { %452 = vmatmul.f32.vlgmr.msra.gmra.mxu0 %v433_v53  ;;  %472 = vmatmul.f32.vlgmr.msra.gmra.mxu1 %v433_v53 }
 0x181   :  { %492 = vmatmul.f32.vlgmr.msra.gmra.mxu2 %v433_v53  ;;  %512 = vmatmul.f32.vlgmr.msra.gmra.mxu3 %v433_v53  ;;  %v2490_v53 = vld [vmem:[#allocation35_spill] sm:$0xff] }
 0x182   :  { %654 = vmatpush.msra.mxu0 %v1506_v7  ;;  %674 = vmatpush.msra.mxu1 %v1502_v6 }
 0x183   :  { %694 = vmatpush.msra.mxu2 %v1488_v0  ;;  %714 = vmatpush.msra.mxu3 %v1490_v1 }
 0x184   :  { %655 = vmatpush.msra.mxu0 %v1516_v11  ;;  %675 = vmatpush.msra.mxu1 %v1508_v8 }
 0x185   :  { %695 = vmatpush.msra.mxu2 %v1492_v2  ;;  %715 = vmatpush.msra.mxu3 %v1496_v3  ;;  %v2471_v2 = vld [vmem:[#allocation25_spill] sm:$0xff] }
 0x186   :  { %656 = vmatpush.msra.mxu0 %v1522_v13  ;;  %676 = vmatpush.msra.mxu1 %v1520_v12 }
 0x187   :  { %696 = vmatpush.msra.mxu2 %v1498_v4  ;;  %716 = vmatpush.msra.mxu3 %v1500_v5  ;;  %v2472_v4 = vld [vmem:[#allocation24_spill] sm:$0xff]  ;;  %v2473_v5 = vld [vmem:[#allocation19_spill] sm:$0xff] }
 0x188   :  { %657 = vmatpush.msra.mxu0 %v1534_v17  ;;  %677 = vmatpush.msra.mxu1 %v1532_v16 }
 0x189   :  { %697 = vmatpush.msra.mxu2 %v1511_v9  ;;  %717 = vmatpush.msra.mxu3 %v1513_v10 }
 0x18a   :  { %658 = vmatpush.msra.mxu0 %v1546_v21  ;;  %678 = vmatpush.msra.mxu1 %v1544_v20 }
 0x18b   :  { %698 = vmatpush.msra.mxu2 %v1525_v14  ;;  %718 = vmatpush.msra.mxu3 %v1527_v15 }
 0x18c   :  { %659 = vmatpush.msra.mxu0 %v1558_v25  ;;  %679 = vmatpush.msra.mxu1 %v1556_v24 }
 0x18d   :  { %699 = vmatpush.msra.mxu2 %v1537_v18  ;;  %719 = vmatpush.msra.mxu3 %v1539_v19 }
 0x18e   :  { %660 = vmatpush.msra.mxu0 %v1570_v29  ;;  %680 = vmatpush.msra.mxu1 %v1568_v28 }
 0x18f   :  { %700 = vmatpush.msra.mxu2 %v1549_v22  ;;  %720 = vmatpush.msra.mxu3 %v1551_v23 }
 0x190   :  { %661 = vmatpush.msra.mxu0 %v1582_v33  ;;  %681 = vmatpush.msra.mxu1 %v1580_v32 }
 0x191   :  { %701 = vmatpush.msra.mxu2 %v1561_v26  ;;  %721 = vmatpush.msra.mxu3 %v1563_v27 }
 0x192   :  { %662 = vmatpush.msra.mxu0 %v1594_v37  ;;  %682 = vmatpush.msra.mxu1 %v1592_v36 }
 0x193   :  { %702 = vmatpush.msra.mxu2 %v1573_v30  ;;  %722 = vmatpush.msra.mxu3 %v1575_v31 }
 0x194   :  { %663 = vmatpush.msra.mxu0 %v1606_v41  ;;  %683 = vmatpush.msra.mxu1 %v1604_v40 }
 0x195   :  { %703 = vmatpush.msra.mxu2 %v1585_v34  ;;  %723 = vmatpush.msra.mxu3 %v1587_v35 }
 0x196   :  { %664 = vmatpush.msra.mxu0 %v1618_v45  ;;  %684 = vmatpush.msra.mxu1 %v2448_v60 }
 0x197   :  { %704 = vmatpush.msra.mxu2 %v2449_v51  ;;  %724 = vmatpush.msra.mxu3 %v2450_v61 }
 0x198   :  { %665 = vmatpush.msra.mxu0 %v2471_v2  ;;  %685 = vmatpush.msra.mxu1 %v2472_v4 }
 0x199   :  { %705 = vmatpush.msra.mxu2 %v2473_v5  ;;  %725 = vmatpush.msra.mxu3 %v2474_v58 }
 0x19a   :  { %666 = vmatpush.msra.mxu0 %v2475_v50  ;;  %686 = vmatpush.msra.mxu1 %v2476_v46 }
 0x19b   :  { %706 = vmatpush.msra.mxu2 %v2477_v48  ;;  %726 = vmatpush.msra.mxu3 %v2478_v39 }
 0x19c   :  { %667 = vmatpush.msra.mxu0 %v2479_v44  ;;  %687 = vmatpush.msra.mxu1 %v2480_v56 }
 0x19d   :  { %707 = vmatpush.msra.mxu2 %v2481_v57  ;;  %727 = vmatpush.msra.mxu3 %v2482_v59 }
 0x19e   :  { %668 = vmatpush.msra.mxu0 %v2483_v63  ;;  %688 = vmatpush.msra.mxu1 %v2484_v55 }
 0x19f   :  { %708 = vmatpush.msra.mxu2 %v2485_v49  ;;  %728 = vmatpush.msra.mxu3 %v2486_v43  ;;  %v435_v43 = vld [vmem:[#allocation2 + $0x2] ss:$8 sm:$0xf] }
 0x1a0   :  { %669 = vmatpush.msra.mxu0 %v2487_v54  ;;  %689 = vmatpush.msra.mxu1 %v2488_v47 }
 0x1a1   :  { %709 = vmatpush.msra.mxu2 %v2489_v52  ;;  %729 = vmatpush.msra.mxu3 %v2490_v53 }
 0x1fd   :  { %v473_v56 = vpop.f32.mrf.mxu1  ;;  %v453_v48 = vpop.f32.mrf.mxu0 }
 0x1fe   :  { %v520_v57 = vrot.slane %v473_v56, 7 }
 0x200   :  { %v523_v55 = vsel %vm302_vm0, %v453_v48, %v520_v57 }
 0x204   :  { %v493_v44 = vpop.f32.mrf.mxu2  ;;  %v513_v59 = vpop.f32.mrf.mxu3 }
 0x205   :  { %v521_v39 = vrot.slane %v493_v44, 6  ;;  %v522_v63 = vrot.slane %v513_v59, 5 }
 0x207   :  { %v524_v49 = vsel %vm304_vm1, %v521_v39, %v522_v63  ;;  %v2075_v63 = vld [vmem:[#allocation3 + $0x1c8] sm:$0xff] }
 0x208   :  { %v525_v54 = vsel %vm306_vm2, %v523_v55, %v524_v49  ;;  %v2079_v55 = vld [vmem:[#allocation3 + $0x1d8] sm:$0xff]  ;;  %v2082_v49 = vld [vmem:[#allocation3 + $0x1a0] sm:$0xff] }
 0x209   :  { %v527_v46 = vadd.f32 %v525_v54, %v435_v43  ;;  %v2085_v43 = vld [vmem:[#allocation3 + $0x1a8] sm:$0xff]  ;;  %v2090_v54 = vld [vmem:[#allocation3 + $0x180] sm:$0xff] }
 0x20b   :  { %1165 = vtanh.f32 %v527_v46  ;;  %v2072_v46 = vld [vmem:[#allocation3 + $0x1c0] sm:$0xff] }
 0x211   :  { %v1166_v47 = vpop.eup %1165 }
 0x212   :  { %v529_v52 = vmul.f32 %v1166_v47, %v1823_v42  ;;  %v2093_v47 = vld [vmem:[#allocation3 + $0x188] sm:$0xff] }
 0x214   :  { %v530_v53 = vadd.f32 %v529_v52, %v1828_v38  ;;  %v2096_v52 = vld [vmem:[#allocation3 + $0x190] sm:$0xff] }
 0x216   :  { %v532_v56 = vrot.slane %v530_v53, 1  ;;  %v535_v50 = vrot.slane %v530_v53, 2  ;;  %v540_v48 = vrot.slane %v530_v53, 3 }
 0x218   :  { %v534_v44 = vmul.f32 %v532_v56, %v1905_v62  ;;  %v537_v59 = vmul.f32 %v535_v50, %v530_v53  ;;  %v1987_v62 = vld [vmem:[#allocation3 + $0x1d0] sm:$0xff]  ;;  %v2069_v50 = vld [vmem:[#allocation3 + $0x1f8] sm:$0xff]  ;;  %v2102_v56 = vld [vmem:[#allocation3 + $0x160] sm:$0xff] }
 0x219   :  { %v2099_v53 = vld [vmem:[#allocation3 + $0x198] sm:$0xff] }
 0x21a   :  { %v1978_v58 = vadd.f32 %v537_v59, %v534_v44  ;;  %v2105_v44 = vld [vmem:[#allocation3 + $0x168] sm:$0xff]  ;;  %v2108_v59 = vld [vmem:[#allocation3 + $0x170] sm:$0xff] }
 0x21c   :  { %1167 = vtanh.f32 %v1978_v58 }
 0x222   :  { %v1168_v39 = vpop.eup %1167 }
 0x223   :  { %v542_v57 = vmul.f32 %v1168_v39, %v540_v48  ;;  %v2111_v48 = vld [vmem:[#allocation3 + $0x178] sm:$0xff]  ;;  %v2114_v39 = vld [vmem:[#allocation3 + $0x140] sm:$0xff] }
 0x225   :  { %561 = vmatmul.f32.vlgmr.msrb.gmra.mxu0 %v542_v57  ;;  %581 = vmatmul.f32.vlgmr.msrb.gmra.mxu1 %v542_v57 }
 0x226   :  { %601 = vmatmul.f32.vlgmr.msrb.gmra.mxu2 %v542_v57  ;;  %621 = vmatmul.f32.vlgmr.msrb.gmra.mxu3 %v542_v57  ;;  %v2117_v57 = vld [vmem:[#allocation3 + $0x148] sm:$0xff] }
 0x227   :  { %763 = vmatpush.msrb.mxu0 %v1506_v7  ;;  %783 = vmatpush.msrb.mxu1 %v1502_v6  ;;  %v1993_v7 = vld [vmem:[#allocation3 + $0x1b0] sm:$0xff]  ;;  %v2493_v6 = vld [vmem:[#allocation28_spill] sm:$0xff] }
 0x228   :  { %803 = vmatpush.msrb.mxu2 %v1488_v0  ;;  %823 = vmatpush.msrb.mxu3 %v1490_v1  ;;  %v1996_v0 = vld [vmem:[#allocation3 + $0x1b8] sm:$0xff]  ;;  %v2491_v1 = vld [vmem:[#allocation20_spill] sm:$0xff] }
 0x229   :  { %764 = vmatpush.msrb.mxu0 %v1516_v11  ;;  %784 = vmatpush.msrb.mxu1 %v1508_v8  ;;  %v2494_v8 = vld [vmem:[#allocation22_spill] sm:$0xff]  ;;  %v2497_v11 = vld [vmem:[#allocation32_spill] sm:$0xff] }
 0x22a   :  { %804 = vmatpush.msrb.mxu2 %v1987_v62  ;;  %824 = vmatpush.msrb.mxu3 %v1496_v3  ;;  %v2492_v3 = vld [vmem:[#allocation29_spill] sm:$0xff] }
 0x22b   :  { %765 = vmatpush.msrb.mxu0 %v1522_v13  ;;  %785 = vmatpush.msrb.mxu1 %v1520_v12  ;;  %v2498_v12 = vld [vmem:[#allocation26_spill] sm:$0xff]  ;;  %v2499_v13 = vld [vmem:[#allocation27_spill] sm:$0xff] }
 0x22c   :  { %805 = vmatpush.msrb.mxu2 %v1993_v7  ;;  %825 = vmatpush.msrb.mxu3 %v1996_v0 }
 0x22d   :  { %766 = vmatpush.msrb.mxu0 %v1534_v17  ;;  %786 = vmatpush.msrb.mxu1 %v1532_v16  ;;  %v2502_v16 = vld [vmem:[#allocation30_spill] sm:$0xff]  ;;  %v2503_v17 = vld [vmem:[#allocation31_spill] sm:$0xff] }
 0x22e   :  { %806 = vmatpush.msrb.mxu2 %v1511_v9  ;;  %826 = vmatpush.msrb.mxu3 %v1513_v10  ;;  %v2495_v9 = vld [vmem:[#allocation23_spill] sm:$0xff]  ;;  %v2496_v10 = vld [vmem:[#allocation33_spill] sm:$0xff] }
 0x22f   :  { %767 = vmatpush.msrb.mxu0 %v1546_v21  ;;  %787 = vmatpush.msrb.mxu1 %v1544_v20  ;;  %v2506_v20 = vld [vmem:[#allocation34_spill] sm:$0xff]  ;;  %v2507_v21 = vld [vmem:[#allocation35_spill] sm:$0xff] }
 0x230   :  { %807 = vmatpush.msrb.mxu2 %v1525_v14  ;;  %827 = vmatpush.msrb.mxu3 %v1527_v15  ;;  %v2500_v14 = vld [vmem:[#allocation37_spill] sm:$0xff]  ;;  %v2501_v15 = vld [vmem:[#allocation36_spill] sm:$0xff] }
 0x231   :  { %768 = vmatpush.msrb.mxu0 %v1558_v25  ;;  %788 = vmatpush.msrb.mxu1 %v1556_v24 }
 0x232   :  { %808 = vmatpush.msrb.mxu2 %v1537_v18  ;;  %828 = vmatpush.msrb.mxu3 %v1539_v19  ;;  %v2504_v18 = vld [vmem:[#allocation39_spill] sm:$0xff]  ;;  %v2505_v19 = vld [vmem:[#allocation38_spill] sm:$0xff] }
 0x233   :  { %769 = vmatpush.msrb.mxu0 %v1570_v29  ;;  %789 = vmatpush.msrb.mxu1 %v1568_v28 }
 0x234   :  { %809 = vmatpush.msrb.mxu2 %v1549_v22  ;;  %829 = vmatpush.msrb.mxu3 %v1551_v23 }
 0x235   :  { %770 = vmatpush.msrb.mxu0 %v1582_v33  ;;  %790 = vmatpush.msrb.mxu1 %v1580_v32 }
 0x236   :  { %810 = vmatpush.msrb.mxu2 %v1561_v26  ;;  %830 = vmatpush.msrb.mxu3 %v1563_v27 }
 0x237   :  { %771 = vmatpush.msrb.mxu0 %v1594_v37  ;;  %791 = vmatpush.msrb.mxu1 %v1592_v36 }
 0x238   :  { %811 = vmatpush.msrb.mxu2 %v1573_v30  ;;  %831 = vmatpush.msrb.mxu3 %v1575_v31  ;;  %v544_v31 = vld [vmem:[#allocation2 + $0x3] ss:$8 sm:$0xf] }
 0x239   :  { %772 = vmatpush.msrb.mxu0 %v1606_v41  ;;  %792 = vmatpush.msrb.mxu1 %v1604_v40 }
 0x23a   :  { %812 = vmatpush.msrb.mxu2 %v1585_v34  ;;  %832 = vmatpush.msrb.mxu3 %v1587_v35 }
 0x23b   :  { %773 = vmatpush.msrb.mxu0 %v1618_v45  ;;  %793 = vmatpush.msrb.mxu1 %v2448_v60 }
 0x23c   :  { %813 = vmatpush.msrb.mxu2 %v2449_v51  ;;  %833 = vmatpush.msrb.mxu3 %v2450_v61 }
 0x23d   :  { %774 = vmatpush.msrb.mxu0 %v2471_v2  ;;  %794 = vmatpush.msrb.mxu1 %v2472_v4  ;;  %v2060_v4 = vld [vmem:[#allocation3 + $0x1e0] sm:$0xff] }
 0x23e   :  { %814 = vmatpush.msrb.mxu2 %v2473_v5  ;;  %834 = vmatpush.msrb.mxu3 %v2491_v1  ;;  %v2063_v5 = vld [vmem:[#allocation3 + $0x1e8] sm:$0xff]  ;;  %v2120_v1 = vld [vmem:[#allocation3 + $0x150] sm:$0xff] }
 0x23f   :  { %775 = vmatpush.msrb.mxu0 %v2492_v3  ;;  %795 = vmatpush.msrb.mxu1 %v2493_v6  ;;  %v2123_v3 = vld [vmem:[#allocation3 + $0x158] sm:$0xff]  ;;  %v2126_v6 = vld [vmem:[#allocation3 + $0x120] sm:$0xff] }
 0x240   :  { %815 = vmatpush.msrb.mxu2 %v2494_v8  ;;  %835 = vmatpush.msrb.mxu3 %v2495_v9  ;;  %v2129_v8 = vld [vmem:[#allocation3 + $0x128] sm:$0xff]  ;;  %v2132_v9 = vld [vmem:[#allocation3 + $0x130] sm:$0xff] }
 0x241   :  { %776 = vmatpush.msrb.mxu0 %v2496_v10  ;;  %796 = vmatpush.msrb.mxu1 %v2497_v11  ;;  %v2135_v10 = vld [vmem:[#allocation3 + $0x138] sm:$0xff]  ;;  %v2138_v11 = vld [vmem:[#allocation3 + $0x100] sm:$0xff] }
 0x242   :  { %816 = vmatpush.msrb.mxu2 %v2498_v12  ;;  %836 = vmatpush.msrb.mxu3 %v2499_v13  ;;  %v2141_v12 = vld [vmem:[#allocation3 + $0x108] sm:$0xff]  ;;  %v2144_v13 = vld [vmem:[#allocation3 + $0x110] sm:$0xff] }
 0x243   :  { %777 = vmatpush.msrb.mxu0 %v2500_v14  ;;  %797 = vmatpush.msrb.mxu1 %v2501_v15  ;;  %v2147_v14 = vld [vmem:[#allocation3 + $0x118] sm:$0xff]  ;;  %v2150_v15 = vld [vmem:[#allocation3 + $0xe0] sm:$0xff] }
 0x244   :  { %817 = vmatpush.msrb.mxu2 %v2502_v16  ;;  %837 = vmatpush.msrb.mxu3 %v2503_v17  ;;  %v2153_v16 = vld [vmem:[#allocation3 + $0xe8] sm:$0xff]  ;;  %v2156_v17 = vld [vmem:[#allocation3 + $0xf0] sm:$0xff] }
 0x245   :  { %778 = vmatpush.msrb.mxu0 %v2504_v18  ;;  %798 = vmatpush.msrb.mxu1 %v2505_v19  ;;  %v2159_v18 = vld [vmem:[#allocation3 + $0xf8] sm:$0xff]  ;;  %v2162_v19 = vld [vmem:[#allocation3 + $0xc0] sm:$0xff] }
 0x246   :  { %818 = vmatpush.msrb.mxu2 %v2506_v20  ;;  %838 = vmatpush.msrb.mxu3 %v2507_v21  ;;  %v2165_v20 = vld [vmem:[#allocation3 + $0xc8] sm:$0xff]  ;;  %v2168_v21 = vld [vmem:[#allocation3 + $0xd0] sm:$0xff] }
 0x2a2   :  { %v582_v22 = vpop.f32.mrf.mxu1  ;;  %v562_v28 = vpop.f32.mrf.mxu0 }
 0x2a3   :  { %v629_v23 = vrot.slane %v582_v22, 7  ;;  %v2171_v22 = vld [vmem:[#allocation3 + $0xd8] sm:$0xff] }
 0x2a5   :  { %v632_v29 = vsel %vm302_vm0, %v562_v28, %v629_v23  ;;  %v2174_v23 = vld [vmem:[#allocation3 + $0xa0] sm:$0xff]  ;;  %v2189_v28 = vld [vmem:[#allocation3 + $0x88] sm:$0xff] }
 0x2a6   :  { %2509 = vst [vmem:[#allocation17_spill] sm:$0xff] %v2189_v28 }
 0x2a9   :  { %v602_v24 = vpop.f32.mrf.mxu2  ;;  %v622_v25 = vpop.f32.mrf.mxu3 }
 0x2aa   :  { %v630_v26 = vrot.slane %v602_v24, 6  ;;  %v631_v27 = vrot.slane %v622_v25, 5  ;;  %v2177_v24 = vld [vmem:[#allocation3 + $0xa8] sm:$0xff]  ;;  %v2180_v25 = vld [vmem:[#allocation3 + $0xb0] sm:$0xff] }
 0x2ac   :  { %v633_v30 = vsel %vm304_vm1, %v630_v26, %v631_v27  ;;  %v2183_v26 = vld [vmem:[#allocation3 + $0xb8] sm:$0xff]  ;;  %v2186_v27 = vld [vmem:[#allocation3 + $0x80] sm:$0xff] }
 0x2ad   :  { %v634_v32 = vsel %vm306_vm2, %v632_v29, %v633_v30  ;;  %2508 = vst [vmem:[#allocation21_spill] sm:$0xff] %v2186_v27  ;;  %v2192_v29 = vld [vmem:[#allocation3 + $0x90] sm:$0xff]  ;;  %v2195_v30 = vld [vmem:[#allocation3 + $0x98] sm:$0xff] }
 0x2ae   :  { %v636_v33 = vadd.f32 %v634_v32, %v544_v31  ;;  %2510 = vst [vmem:[#allocation18_spill] sm:$0xff] %v2192_v29  ;;  %v2198_v31 = vld [vmem:[#allocation3 + $0x60] sm:$0xff]  ;;  %v2201_v32 = vld [vmem:[#allocation3 + $0x68] sm:$0xff] }
 0x2af   :  { %2511 = vst [vmem:[#allocation25_spill] sm:$0xff] %v2195_v30 }
 0x2b0   :  { %1169 = vtanh.f32 %v636_v33  ;;  %2512 = vst [vmem:[#allocation24_spill] sm:$0xff] %v2198_v31  ;;  %v2204_v33 = vld [vmem:[#allocation3 + $0x70] sm:$0xff] }
 0x2b1   :  { %2513 = vst [vmem:[#allocation19_spill] sm:$0xff] %v2201_v32 }
 0x2b2   :  { %2514 = vst [vmem:[#allocation20_spill] sm:$0xff] %v2204_v33 }
 0x2b6   :  { %v1170_v34 = vpop.eup %1169 }
 0x2b7   :  { %v638_v35 = vmul.f32 %v1170_v34, %v1823_v42  ;;  %v2207_v34 = vld [vmem:[#allocation3 + $0x78] sm:$0xff] }
 0x2b8   :  { %2515 = vst [vmem:[#allocation29_spill] sm:$0xff] %v2207_v34 }
 0x2b9   :  { %v639_v36 = vadd.f32 %v638_v35, %v1828_v38  ;;  %v2210_v35 = vld [vmem:[#allocation3 + $0x40] sm:$0xff] }
 0x2ba   :  { %2516 = vst [vmem:[#allocation28_spill] sm:$0xff] %v2210_v35 }
 0x2bb   :  { %v641_v37 = vrot.slane %v639_v36, 1  ;;  %v644_v40 = vrot.slane %v639_v36, 2  ;;  %v649_v51 = vrot.slane %v639_v36, 3 }
 0x2bd   :  { %v643_v41 = vmul.f32 %v641_v37, %v1978_v58  ;;  %v646_v45 = vmul.f32 %v644_v40, %v639_v36  ;;  %v2066_v58 = vld [vmem:[#allocation3 + $0x1f0] sm:$0xff]  ;;  %v2213_v36 = vld [vmem:[#allocation3 + $0x48] sm:$0xff]  ;;  %v2219_v40 = vld [vmem:[#allocation3 + $0x58] sm:$0xff] }
 0x2be   :  { %2517 = vst [vmem:[#allocation22_spill] sm:$0xff] %v2213_v36  ;;  %v2216_v37 = vld [vmem:[#allocation3 + $0x50] sm:$0xff] }
 0x2bf   :  { %v2057_v60 = vadd.f32 %v646_v45, %v643_v41  ;;  %2518 = vst [vmem:[#allocation23_spill] sm:$0xff] %v2216_v37  ;;  %v2222_v41 = vld [vmem:[#allocation3 + $0x20] sm:$0xff]  ;;  %v2225_v45 = vld [vmem:[#allocation3 + $0x28] sm:$0xff] }
 0x2c0   :  { %2519 = vst [vmem:[#allocation33_spill] sm:$0xff] %v2219_v40 }
 0x2c1   :  { %1171 = vtanh.f32 %v2057_v60  ;;  %2520 = vst [vmem:[#allocation32_spill] sm:$0xff] %v2222_v41 }
 0x2c2   :  { %2521 = vst [vmem:[#allocation26_spill] sm:$0xff] %v2225_v45 }
 0x2c7   :  { %v1172_v61 = vpop.eup %1171 }
 0x2c8   :  { %v651_v2 = vmul.f32 %v1172_v61, %v649_v51  ;;  %v2228_v51 = vld [vmem:[#allocation3 + $0x30] sm:$0xff]  ;;  %v2231_v61 = vld [vmem:[#allocation3 + $0x38] sm:$0xff] }
 0x2c9   :  { %2522 = vst [vmem:[#allocation27_spill] sm:$0xff] %v2228_v51 }
 0x2ca   :  { %670 = vmatmul.f32.vlgmr.msra.gmra.mxu0 %v651_v2  ;;  %690 = vmatmul.f32.vlgmr.msra.gmra.mxu1 %v651_v2  ;;  %2523 = vst [vmem:[#allocation37_spill] sm:$0xff] %v2231_v61 }
 0x2cb   :  { %710 = vmatmul.f32.vlgmr.msra.gmra.mxu2 %v651_v2  ;;  %730 = vmatmul.f32.vlgmr.msra.gmra.mxu3 %v651_v2  ;;  %v2234_v2 = vld [vmem:[#allocation3] sm:$0xff] }
 0x2cc   :  { %872 = vmatpush.msra.mxu0 %v2060_v4  ;;  %892 = vmatpush.msra.mxu1 %v2063_v5  ;;  %2524 = vst [vmem:[#allocation36_spill] sm:$0xff] %v2234_v2 }
 0x2cd   :  { %912 = vmatpush.msra.mxu2 %v2066_v58  ;;  %932 = vmatpush.msra.mxu3 %v2069_v50 }
 0x2ce   :  { %873 = vmatpush.msra.mxu0 %v2072_v46  ;;  %893 = vmatpush.msra.mxu1 %v2075_v63 }
 0x2cf   :  { %913 = vmatpush.msra.mxu2 %v1987_v62  ;;  %933 = vmatpush.msra.mxu3 %v2079_v55 }
 0x2d0   :  { %874 = vmatpush.msra.mxu0 %v2082_v49  ;;  %894 = vmatpush.msra.mxu1 %v2085_v43 }
 0x2d1   :  { %914 = vmatpush.msra.mxu2 %v1993_v7  ;;  %934 = vmatpush.msra.mxu3 %v1996_v0 }
 0x2d2   :  { %875 = vmatpush.msra.mxu0 %v2090_v54  ;;  %895 = vmatpush.msra.mxu1 %v2093_v47 }
 0x2d3   :  { %915 = vmatpush.msra.mxu2 %v2096_v52  ;;  %935 = vmatpush.msra.mxu3 %v2099_v53 }
 0x2d4   :  { %876 = vmatpush.msra.mxu0 %v2102_v56  ;;  %896 = vmatpush.msra.mxu1 %v2105_v44 }
 0x2d5   :  { %916 = vmatpush.msra.mxu2 %v2108_v59  ;;  %936 = vmatpush.msra.mxu3 %v2111_v48 }
 0x2d6   :  { %877 = vmatpush.msra.mxu0 %v2114_v39  ;;  %897 = vmatpush.msra.mxu1 %v2117_v57 }
 0x2d7   :  { %917 = vmatpush.msra.mxu2 %v2120_v1  ;;  %937 = vmatpush.msra.mxu3 %v2123_v3 }
 0x2d8   :  { %878 = vmatpush.msra.mxu0 %v2126_v6  ;;  %898 = vmatpush.msra.mxu1 %v2129_v8 }
 0x2d9   :  { %918 = vmatpush.msra.mxu2 %v2132_v9  ;;  %938 = vmatpush.msra.mxu3 %v2135_v10 }
 0x2da   :  { %879 = vmatpush.msra.mxu0 %v2138_v11  ;;  %899 = vmatpush.msra.mxu1 %v2141_v12 }
 0x2db   :  { %919 = vmatpush.msra.mxu2 %v2144_v13  ;;  %939 = vmatpush.msra.mxu3 %v2147_v14 }
 0x2dc   :  { %880 = vmatpush.msra.mxu0 %v2150_v15  ;;  %900 = vmatpush.msra.mxu1 %v2153_v16 }
 0x2dd   :  { %920 = vmatpush.msra.mxu2 %v2156_v17  ;;  %940 = vmatpush.msra.mxu3 %v2159_v18 }
 0x2de   :  { %881 = vmatpush.msra.mxu0 %v2162_v19  ;;  %901 = vmatpush.msra.mxu1 %v2165_v20 }
 0x2df   :  { %921 = vmatpush.msra.mxu2 %v2168_v21  ;;  %941 = vmatpush.msra.mxu3 %v2171_v22 }
 0x2e0   :  { %882 = vmatpush.msra.mxu0 %v2174_v23  ;;  %902 = vmatpush.msra.mxu1 %v2177_v24 }
 0x2e1   :  { %922 = vmatpush.msra.mxu2 %v2180_v25  ;;  %942 = vmatpush.msra.mxu3 %v2183_v26 }
 0x2e2   :  { %883 = vmatpush.msra.mxu0 %v2186_v27  ;;  %903 = vmatpush.msra.mxu1 %v2189_v28 }
 0x2e3   :  { %923 = vmatpush.msra.mxu2 %v2192_v29  ;;  %943 = vmatpush.msra.mxu3 %v2195_v30 }
 0x2e4   :  { %884 = vmatpush.msra.mxu0 %v2198_v31  ;;  %904 = vmatpush.msra.mxu1 %v2201_v32 }
 0x2e5   :  { %924 = vmatpush.msra.mxu2 %v2204_v33  ;;  %944 = vmatpush.msra.mxu3 %v2207_v34 }
 0x2e6   :  { %885 = vmatpush.msra.mxu0 %v2210_v35  ;;  %905 = vmatpush.msra.mxu1 %v2213_v36 }
 0x2e7   :  { %925 = vmatpush.msra.mxu2 %v2216_v37  ;;  %945 = vmatpush.msra.mxu3 %v2219_v40  ;;  %v2237_v40 = vld [vmem:[#allocation3 + $0x8] sm:$0xff] }
 0x2e8   :  { %886 = vmatpush.msra.mxu0 %v2222_v41  ;;  %906 = vmatpush.msra.mxu1 %v2225_v45  ;;  %2525 = vst [vmem:[#allocation30_spill] sm:$0xff] %v2237_v40  ;;  %v2240_v41 = vld [vmem:[#allocation3 + $0x10] sm:$0xff]  ;;  %v2243_v45 = vld [vmem:[#allocation3 + $0x18] sm:$0xff] }
 0x2e9   :  { %926 = vmatpush.msra.mxu2 %v2228_v51  ;;  %946 = vmatpush.msra.mxu3 %v2231_v61  ;;  %2526 = vst [vmem:[#allocation31_spill] sm:$0xff] %v2240_v41 }
 0x2ea   :  { %887 = vmatpush.msra.mxu0 %v2234_v2  ;;  %907 = vmatpush.msra.mxu1 %v2237_v40  ;;  %2527 = vst [vmem:[#allocation39_spill] sm:$0xff] %v2243_v45  ;;  %v653_v40 = vld [vmem:[#allocation2 + $0x4] ss:$8 sm:$0xf] }
 0x2eb   :  { %927 = vmatpush.msra.mxu2 %v2240_v41  ;;  %947 = vmatpush.msra.mxu3 %v2243_v45 }
 0x347   :  { %v691_v51 = vpop.f32.mrf.mxu1  ;;  %v671_v33 = vpop.f32.mrf.mxu0 }
 0x348   :  { %v738_v37 = vrot.slane %v691_v51, 7 }
 0x34a   :  { %v741_v2 = vsel %vm302_vm0, %v671_v33, %v738_v37 }
 0x34e   :  { %v711_v36 = vpop.f32.mrf.mxu2  ;;  %v731_v61 = vpop.f32.mrf.mxu3 }
 0x34f   :  { %v739_v35 = vrot.slane %v711_v36, 6  ;;  %v740_v34 = vrot.slane %v731_v61, 5 }
 0x351   :  { %v742_v32 = vsel %vm304_vm1, %v739_v35, %v740_v34 }
 0x352   :  { %v743_v31 = vsel %vm306_vm2, %v741_v2, %v742_v32 }
 0x353   :  { %v745_v30 = vadd.f32 %v743_v31, %v653_v40  ;;  %v871_v40 = vld [vmem:[#allocation2 + $0x6] ss:$8 sm:$0xf] }
 0x355   :  { %1173 = vtanh.f32 %v745_v30 }
 0x35b   :  { %v1174_v41 = vpop.eup %1173 }
 0x35c   :  { %v747_v29 = vmul.f32 %v1174_v41, %v1823_v42 }
 0x35e   :  { %v748_v45 = vadd.f32 %v747_v29, %v1828_v38 }
 0x360   :  { %v750_v51 = vrot.slane %v748_v45, 1  ;;  %v753_v28 = vrot.slane %v748_v45, 2  ;;  %v758_v33 = vrot.slane %v748_v45, 3 }
 0x362   :  { %v752_v36 = vmul.f32 %v750_v51, %v2057_v60  ;;  %v755_v61 = vmul.f32 %v753_v28, %v748_v45  ;;  %v2531_v60 = vld [vmem:[#allocation25_spill] sm:$0xff] }
 0x364   :  { %v2252_v27 = vadd.f32 %v755_v61, %v752_v36 }
 0x366   :  { %1175 = vtanh.f32 %v2252_v27 }
 0x36c   :  { %v1176_v34 = vpop.eup %1175 }
 0x36d   :  { %v760_v35 = vmul.f32 %v1176_v34, %v758_v33 }
 0x36f   :  { %779 = vmatmul.f32.vlgmr.msrb.gmra.mxu0 %v760_v35  ;;  %799 = vmatmul.f32.vlgmr.msrb.gmra.mxu1 %v760_v35 }
 0x370   :  { %819 = vmatmul.f32.vlgmr.msrb.gmra.mxu2 %v760_v35  ;;  %839 = vmatmul.f32.vlgmr.msrb.gmra.mxu3 %v760_v35 }
 0x371   :  { %981 = vmatpush.msrb.mxu0 %v2060_v4  ;;  %1001 = vmatpush.msrb.mxu1 %v2063_v5  ;;  %v2532_v4 = vld [vmem:[#allocation24_spill] sm:$0xff]  ;;  %v2533_v5 = vld [vmem:[#allocation19_spill] sm:$0xff] }
 0x372   :  { %1021 = vmatpush.msrb.mxu2 %v2066_v58  ;;  %1041 = vmatpush.msrb.mxu3 %v2069_v50  ;;  %v2534_v58 = vld [vmem:[#allocation20_spill] sm:$0xff]  ;;  %v2535_v50 = vld [vmem:[#allocation29_spill] sm:$0xff] }
 0x373   :  { %982 = vmatpush.msrb.mxu0 %v2072_v46  ;;  %1002 = vmatpush.msrb.mxu1 %v2075_v63  ;;  %v2536_v46 = vld [vmem:[#allocation28_spill] sm:$0xff]  ;;  %v2537_v63 = vld [vmem:[#allocation22_spill] sm:$0xff] }
 0x374   :  { %1022 = vmatpush.msrb.mxu2 %v1987_v62  ;;  %1042 = vmatpush.msrb.mxu3 %v2079_v55  ;;  %v2528_v62 = vld [vmem:[#allocation21_spill] sm:$0xff]  ;;  %v2538_v55 = vld [vmem:[#allocation23_spill] sm:$0xff] }
 0x375   :  { %983 = vmatpush.msrb.mxu0 %v2082_v49  ;;  %1003 = vmatpush.msrb.mxu1 %v2085_v43  ;;  %v2539_v49 = vld [vmem:[#allocation33_spill] sm:$0xff]  ;;  %v2540_v43 = vld [vmem:[#allocation32_spill] sm:$0xff] }
 0x376   :  { %1023 = vmatpush.msrb.mxu2 %v1993_v7  ;;  %1043 = vmatpush.msrb.mxu3 %v1996_v0  ;;  %v2529_v7 = vld [vmem:[#allocation17_spill] sm:$0xff]  ;;  %v2530_v0 = vld [vmem:[#allocation18_spill] sm:$0xff] }
 0x377   :  { %984 = vmatpush.msrb.mxu0 %v2090_v54  ;;  %1004 = vmatpush.msrb.mxu1 %v2093_v47  ;;  %v2541_v54 = vld [vmem:[#allocation26_spill] sm:$0xff]  ;;  %v2542_v47 = vld [vmem:[#allocation27_spill] sm:$0xff] }
 0x378   :  { %1024 = vmatpush.msrb.mxu2 %v2096_v52  ;;  %1044 = vmatpush.msrb.mxu3 %v2099_v53  ;;  %v2543_v52 = vld [vmem:[#allocation37_spill] sm:$0xff]  ;;  %v2544_v53 = vld [vmem:[#allocation36_spill] sm:$0xff] }
 0x379   :  { %985 = vmatpush.msrb.mxu0 %v2102_v56  ;;  %1005 = vmatpush.msrb.mxu1 %v2105_v44  ;;  %v2545_v56 = vld [vmem:[#allocation30_spill] sm:$0xff]  ;;  %v2546_v44 = vld [vmem:[#allocation31_spill] sm:$0xff] }
 0x37a   :  { %1025 = vmatpush.msrb.mxu2 %v2108_v59  ;;  %1045 = vmatpush.msrb.mxu3 %v2111_v48  ;;  %v2547_v59 = vld [vmem:[#allocation39_spill] sm:$0xff] }
 0x37b   :  { %986 = vmatpush.msrb.mxu0 %v2114_v39  ;;  %1006 = vmatpush.msrb.mxu1 %v2117_v57 }
 0x37c   :  { %1026 = vmatpush.msrb.mxu2 %v2120_v1  ;;  %1046 = vmatpush.msrb.mxu3 %v2123_v3 }
 0x37d   :  { %987 = vmatpush.msrb.mxu0 %v2126_v6  ;;  %1007 = vmatpush.msrb.mxu1 %v2129_v8 }
 0x37e   :  { %1027 = vmatpush.msrb.mxu2 %v2132_v9  ;;  %1047 = vmatpush.msrb.mxu3 %v2135_v10 }
 0x37f   :  { %988 = vmatpush.msrb.mxu0 %v2138_v11  ;;  %1008 = vmatpush.msrb.mxu1 %v2141_v12  ;;  %v762_v11 = vld [vmem:[#allocation2 + $0x5] ss:$8 sm:$0xf] }
 0x380   :  { %1028 = vmatpush.msrb.mxu2 %v2144_v13  ;;  %1048 = vmatpush.msrb.mxu3 %v2147_v14 }
 0x381   :  { %989 = vmatpush.msrb.mxu0 %v2150_v15  ;;  %1009 = vmatpush.msrb.mxu1 %v2153_v16 }
 0x382   :  { %1029 = vmatpush.msrb.mxu2 %v2156_v17  ;;  %1049 = vmatpush.msrb.mxu3 %v2159_v18 }
 0x383   :  { %990 = vmatpush.msrb.mxu0 %v2162_v19  ;;  %1010 = vmatpush.msrb.mxu1 %v2165_v20 }
 0x384   :  { %1030 = vmatpush.msrb.mxu2 %v2168_v21  ;;  %1050 = vmatpush.msrb.mxu3 %v2171_v22 }
 0x385   :  { %991 = vmatpush.msrb.mxu0 %v2174_v23  ;;  %1011 = vmatpush.msrb.mxu1 %v2177_v24 }
 0x386   :  { %1031 = vmatpush.msrb.mxu2 %v2180_v25  ;;  %1051 = vmatpush.msrb.mxu3 %v2183_v26 }
 0x387   :  { %992 = vmatpush.msrb.mxu0 %v2528_v62  ;;  %1012 = vmatpush.msrb.mxu1 %v2529_v7 }
 0x388   :  { %1032 = vmatpush.msrb.mxu2 %v2530_v0  ;;  %1052 = vmatpush.msrb.mxu3 %v2531_v60 }
 0x389   :  { %993 = vmatpush.msrb.mxu0 %v2532_v4  ;;  %1013 = vmatpush.msrb.mxu1 %v2533_v5  ;;  %v1103_v4 = vld [vmem:[#allocation6 + $0x78] sm:$0xff]  ;;  %v1102_v5 = vld [vmem:[#allocation6 + $0x70] sm:$0xff] }
 0x38a   :  { %1033 = vmatpush.msrb.mxu2 %v2534_v58  ;;  %1053 = vmatpush.msrb.mxu3 %v2535_v50  ;;  %v1099_v58 = vld [vmem:[#allocation6 + $0x58] sm:$0xff]  ;;  %v1098_v50 = vld [vmem:[#allocation6 + $0x50] sm:$0xff] }
 0x38b   :  { %994 = vmatpush.msrb.mxu0 %v2536_v46  ;;  %1014 = vmatpush.msrb.mxu1 %v2537_v63  ;;  %v1097_v46 = vld [vmem:[#allocation6 + $0x48] sm:$0xff]  ;;  %v1096_v63 = vld [vmem:[#allocation6 + $0x40] sm:$0xff] }
 0x38c   :  { %1034 = vmatpush.msrb.mxu2 %v2538_v55  ;;  %1054 = vmatpush.msrb.mxu3 %v2539_v49  ;;  %v1095_v55 = vld [vmem:[#allocation6 + $0x38] sm:$0xff]  ;;  %v1094_v49 = vld [vmem:[#allocation6 + $0x30] sm:$0xff] }
 0x38d   :  { %995 = vmatpush.msrb.mxu0 %v2540_v43  ;;  %1015 = vmatpush.msrb.mxu1 %v2541_v54  ;;  %v1093_v43 = vld [vmem:[#allocation6 + $0x28] sm:$0xff]  ;;  %v1092_v54 = vld [vmem:[#allocation6 + $0x20] sm:$0xff] }
 0x38e   :  { %1035 = vmatpush.msrb.mxu2 %v2542_v47  ;;  %1055 = vmatpush.msrb.mxu3 %v2543_v52  ;;  %v1091_v47 = vld [vmem:[#allocation6 + $0x18] sm:$0xff]  ;;  %v1090_v52 = vld [vmem:[#allocation6 + $0x10] sm:$0xff] }
 0x38f   :  { %996 = vmatpush.msrb.mxu0 %v2544_v53  ;;  %1016 = vmatpush.msrb.mxu1 %v2545_v56  ;;  %v1089_v53 = vld [vmem:[#allocation6 + $0x8] sm:$0xff] }
 0x390   :  { %1036 = vmatpush.msrb.mxu2 %v2546_v44  ;;  %1056 = vmatpush.msrb.mxu3 %v2547_v59  ;;  %v1088_v44 = vld [vmem:[#allocation6] sm:$0xff] }
 0x3ec   :  { %v800_v48 = vpop.f32.mrf.mxu1  ;;  %v780_v8 = vpop.f32.mrf.mxu0 }
 0x3ed   :  { %v847_v39 = vrot.slane %v800_v48, 7 }
 0x3ef   :  { %v850_v9 = vsel %vm302_vm0, %v780_v8, %v847_v39 }
 0x3f3   :  { %v820_v57 = vpop.f32.mrf.mxu2  ;;  %v840_v1 = vpop.f32.mrf.mxu3 }
 0x3f4   :  { %v848_v3 = vrot.slane %v820_v57, 6  ;;  %v849_v6 = vrot.slane %v840_v1, 5 }
 0x3f6   :  { %v851_v10 = vsel %vm304_vm1, %v848_v3, %v849_v6 }
 0x3f7   :  { %v852_v12 = vsel %vm306_vm2, %v850_v9, %v851_v10  ;;  %v980_v9 = vld [vmem:[#allocation2 + $0x7] ss:$8 sm:$0xf] }
 0x3f8   :  { %v854_v13 = vadd.f32 %v852_v12, %v762_v11 }
 0x3fa   :  { %1177 = vtanh.f32 %v854_v13  ;;  %v1253_v13 = vld [vmem:[%s2350_s8] sm:$0xf] }
 0x400   :  { %v1178_v14 = vpop.eup %1177 }
 0x401   :  { %v856_v15 = vmul.f32 %v1178_v14, %v1823_v42 }
 0x403   :  { %v857_v16 = vadd.f32 %v856_v15, %v1828_v38  ;;  %v1254_v15 = vld [vmem:[%s2351_s9] sm:$0xf] }
 0x405   :  { %v859_v17 = vrot.slane %v857_v16, 1  ;;  %v862_v18 = vrot.slane %v857_v16, 2  ;;  %v867_v22 = vrot.slane %v857_v16, 3 }
 0x407   :  { %v861_v19 = vmul.f32 %v859_v17, %v2252_v27  ;;  %v864_v20 = vmul.f32 %v862_v18, %v857_v16 }
 0x409   :  { %v865_v21 = vadd.f32 %v864_v20, %v861_v19 }
 0x40b   :  { %1179 = vtanh.f32 %v865_v21 }
 0x411   :  { %v1180_v23 = vpop.eup %1179 }
 0x412   :  { %v869_v24 = vmul.f32 %v1180_v23, %v867_v22 }
 0x414   :  { %888 = vmatmul.f32.vlgmr.msra.gmra.mxu0 %v869_v24  ;;  %908 = vmatmul.f32.vlgmr.msra.gmra.mxu1 %v869_v24 }
 0x415   :  { %928 = vmatmul.f32.vlgmr.msra.gmra.mxu2 %v869_v24  ;;  %948 = vmatmul.f32.vlgmr.msra.gmra.mxu3 %v869_v24 }
 0x416   :  { %1105 = vmatpush.msra.mxu0 %v1103_v4 }
 0x418   :  { %1106 = vmatpush.msra.mxu0 %v1102_v5 }
 0x491   :  { %v909_v25 = vpop.f32.mrf.mxu1  ;;  %v889_v32 = vpop.f32.mrf.mxu0 }
 0x492   :  { %v956_v26 = vrot.slane %v909_v25, 7  ;;  %v1104_v25 = vld [vmem:[#allocation8] sm:$0x1] }
 0x494   :  { %v959_v37 = vsel %vm302_vm0, %v889_v32, %v956_v26 }
 0x498   :  { %v929_v28 = vpop.f32.mrf.mxu2  ;;  %v949_v29 = vpop.f32.mrf.mxu3 }
 0x499   :  { %v957_v30 = vrot.slane %v929_v28, 6  ;;  %v958_v31 = vrot.slane %v949_v29, 5 }
 0x49b   :  { %v960_v27 = vsel %vm304_vm1, %v957_v30, %v958_v31 }
 0x49c   :  { %v961_v41 = vsel %vm306_vm2, %v959_v37, %v960_v27 }
 0x49d   :  { %v963_v45 = vadd.f32 %v961_v41, %v871_v40 }
 0x49f   :  { %1181 = vtanh.f32 %v963_v45 }
 0x4a5   :  { %v1182_v2 = vpop.eup %1181 }
 0x4a6   :  { %v965_v51 = vmul.f32 %v1182_v2, %v1823_v42  ;;  %v1101_v42 = vld [vmem:[#allocation6 + $0x68] sm:$0xff] }
 0x4a7   :  { %1107 = vmatpush.msra.mxu0 %v1101_v42 }
 0x4a8   :  { %v966_v36 = vadd.f32 %v965_v51, %v1828_v38  ;;  %v1100_v38 = vld [vmem:[#allocation6 + $0x60] sm:$0xff] }
 0x4a9   :  { %1108 = vmatpush.msra.mxu0 %v1100_v38 }
 0x4aa   :  { %v968_v61 = vrot.slane %v966_v36, 1  ;;  %v971_v33 = vrot.slane %v966_v36, 2  ;;  %v976_v7 = vrot.slane %v966_v36, 3 }
 0x4ab   :  { %1109 = vmatpush.msra.mxu0 %v1099_v58 }
 0x4ac   :  { %v970_v34 = vmul.f32 %v968_v61, %v865_v21  ;;  %v973_v35 = vmul.f32 %v971_v33, %v966_v36 }
 0x4ad   :  { %1110 = vmatpush.msra.mxu0 %v1098_v50 }
 0x4ae   :  { %v974_v62 = vadd.f32 %v973_v35, %v970_v34 }
 0x4af   :  { %1111 = vmatpush.msra.mxu0 %v1097_v46 }
 0x4b0   :  { %1183 = vtanh.f32 %v974_v62 }
 0x4b1   :  { %1112 = vmatpush.msra.mxu0 %v1096_v63 }
 0x4b3   :  { %1113 = vmatpush.msra.mxu0 %v1095_v55 }
 0x4b5   :  { %1114 = vmatpush.msra.mxu0 %v1094_v49 }
 0x4b6   :  { %v1184_v0 = vpop.eup %1183 }
 0x4b7   :  { %v978_v60 = vmul.f32 %v1184_v0, %v976_v7  ;;  %1115 = vmatpush.msra.mxu0 %v1093_v43 }
 0x4b9   :  { %997 = vmatmul.f32.vlgmr.msrb.gmra.mxu0 %v978_v60  ;;  %1017 = vmatmul.f32.vlgmr.msrb.gmra.mxu1 %v978_v60 }
 0x4ba   :  { %1037 = vmatmul.f32.vlgmr.msrb.gmra.mxu2 %v978_v60  ;;  %1057 = vmatmul.f32.vlgmr.msrb.gmra.mxu3 %v978_v60 }
 0x4bb   :  { %1116 = vmatpush.msra.mxu0 %v1092_v54 }
 0x4bd   :  { %1117 = vmatpush.msra.mxu0 %v1091_v47 }
 0x4bf   :  { %1118 = vmatpush.msra.mxu0 %v1090_v52 }
 0x4c1   :  { %1119 = vmatpush.msra.mxu0 %v1089_v53 }
 0x4c3   :  { %1120 = vmatpush.msra.mxu0 %v1088_v44 }
 0x536   :  { %v1018_v56 = vpop.f32.mrf.mxu1  ;;  %v998_v3 = vpop.f32.mrf.mxu0 }
 0x537   :  { %v1065_v59 = vrot.slane %v1018_v56, 7 }
 0x539   :  { %v1068_v6 = vsel %vm302_vm0, %v998_v3, %v1065_v59 }
 0x53d   :  { %v1038_v48 = vpop.f32.mrf.mxu2  ;;  %v1058_v39 = vpop.f32.mrf.mxu3 }
 0x53e   :  { %v1066_v57 = vrot.slane %v1038_v48, 6  ;;  %v1067_v1 = vrot.slane %v1058_v39, 5 }
 0x540   :  { %v1069_v8 = vsel %vm304_vm1, %v1066_v57, %v1067_v1 }
 0x541   :  { %v1070_v10 = vsel %vm306_vm2, %v1068_v6, %v1069_v8 }
 0x542   :  { %v1072_v11 = vadd.f32 %v1070_v10, %v980_v9 }
 0x544   :  { %1185 = vtanh.f32 %v1072_v11 }
 0x54a   :  { %v1186_v12 = vpop.eup %1185 }
 0x54b   :  { %v1074_v14 = vmul.f32 %v1253_v13, %v1186_v12 }
 0x54d   :  { %v1075_v16 = vadd.f32 %v1254_v15, %v1074_v14 }
 0x54f   :  { %v1077_v17 = vrot.slane %v1075_v16, 1  ;;  %v1080_v18 = vrot.slane %v1075_v16, 2  ;;  %v1085_v22 = vrot.slane %v1075_v16, 3 }
 0x551   :  { %v1079_v19 = vmul.f32 %v1077_v17, %v974_v62  ;;  %v1082_v20 = vmul.f32 %v1080_v18, %v1075_v16 }
 0x553   :  { %v1083_v21 = vadd.f32 %v1082_v20, %v1079_v19 }
 0x555   :  { %1187 = vtanh.f32 %v1083_v21 }
 0x55b   :  { %v1188_v23 = vpop.eup %1187 }
 0x55c   :  { %v1087_v24 = vmul.f32 %v1188_v23, %v1085_v22 }
 0x55e   :  { %1121 = vmatmul.f32.vlgmr.msra.gmra.mxu0 %v1087_v24 }
 0x5db   :  { %v1122_v26 = vpop.f32.mrf.mxu0 }
 0x5dc   :  { %v1123_v28 = vadd.f32 %v1122_v26, %v1104_v25 }
 0x5de   :  { %1125 = vst [vmem:[#allocation12] sm:$0x1] %v1123_v28 }
 0x5df   :  { %1136 = dma.vmem_to_hbm [thread:$0]  %s1132_s28, 16, %s1134_s30, [#allocation5]  }
 0x5e0   :  { %1405 = dma.done.wait [#allocation5], 16  }
 0x5e1   :  { %1406 = vsyncadd [#allocation5], 4294967280 }
 0x5e2   :  { %1141 = vsyncpa [#allocation4], 1 }
 0x5e3   :  { %1142 = vsyncpa [#allocation7], 1 }
 0x5e4   :  { %1143 = vsyncpa [#allocation10], 1 }
 0x5e5   :  { %1144 = vsyncpa [#allocation5], 1 }

</bundles_post_ra>
